<compile_context>
chip_gen: v6e
topology: v6e:2x2x1
jax: 0.10.0
libtpu: 0.0.40
codegen_flags: <defaults>
</compile_context>

<pallas_src>
import functools

import numpy as np
import jax
import jax.numpy as jnp
from jax.experimental import pallas as pl
from jax.experimental.pallas import tpu as pltpu


def get_sinusoid_encoding_table(n_position, d_hid, padding_idx=None):
    """Deterministic sinusoid positional encoding table (same as the PyTorch ref)."""
    pos = np.arange(n_position, dtype=np.float64)[:, None]          # (P, 1)
    hid = np.arange(d_hid, dtype=np.float64)[None, :]                # (1, H)
    angle = pos / np.power(10000.0, 2.0 * (hid // 2) / d_hid)        # (P, H)
    table = np.empty((n_position, d_hid), dtype=np.float64)
    table[:, 0::2] = np.sin(angle[:, 0::2])
    table[:, 1::2] = np.cos(angle[:, 1::2])
    if padding_idx is not None:
        table[padding_idx] = 0.0
    return jnp.asarray(table, dtype=jnp.float32)


def _round_up(x, m):
    return ((x + m - 1) // m) * m


def _embed_kernel(ids_ref, table_ref, out_ref, *, pack, p_pad):
    # ids_ref:   (R, pack) int32  -- `pack` token ids per output row
    # table_ref: (P_pad, H) f32   -- whole (padded) sinusoid table, VMEM-resident
    # out_ref:   (R, pack*H) f32  -- lane-dense packed embeddings
    ids = ids_ref[...]
    table = table_ref[...]
    rows = ids.shape[0]
    col = jax.lax.broadcasted_iota(jnp.int32, (rows, p_pad), 1)

    parts = []
    for j in range(pack):
        # One-hot (R, P_pad) for the j-th packed token of each row; the matmul
        # runs on the MXU and replaces per-token dynamic slicing.
        onehot = (col == ids[:, j:j + 1]).astype(table.dtype)
        parts.append(
            jnp.dot(
                onehot,
                table,
                preferred_element_type=jnp.float32,
                precision=jax.lax.Precision.HIGHEST,  # keep f32 table values exact-ish
            )
        )
    out = parts[0] if pack == 1 else jnp.concatenate(parts, axis=1)
    out_ref[...] = out.astype(out_ref.dtype)


def bert_position_embedding(ids, table, *, tq_cap=1024):
    """ids: (B, S) int; table: (P, H) float32 -> (B, S, H) float32."""
    B, S = ids.shape
    P, H = table.shape
    n_tok = B * S

    # Pack several tokens per 128-lane output row when H divides 128, so the
    # output BlockSpec is lane-dense (unmasked stores).
    pack = (128 // H) if (H < 128 and 128 % H == 0) else 1
    w = pack * H
    p_pad = _round_up(P, 128)

    # Tokens per grid step; keep output rows-per-block a multiple of 8 sublanes.
    tq_align = 8 * pack
    tq = min(_round_up(tq_cap, tq_align), _round_up(n_tok, tq_align))
    n_pad = _round_up(n_tok, tq)

    flat_ids = jnp.zeros((n_pad,), jnp.int32).at[:n_tok].set(
        ids.reshape(n_tok).astype(jnp.int32)
    )
    ids_2d = flat_ids.reshape(n_pad // pack, pack)

    table_padded = jnp.zeros((p_pad, H), table.dtype).at[:P, :].set(table)

    rows_total = n_pad // pack
    r_blk = tq // pack
    grid = (rows_total // r_blk,)

    kernel = functools.partial(_embed_kernel, pack=pack, p_pad=p_pad)

    out_packed = pl.pallas_call(
        kernel,
        out_shape=jax.ShapeDtypeStruct((rows_total, w), table.dtype),
        grid_spec=pltpu.PrefetchScalarGridSpec(
            num_scalar_prefetch=0,
            grid=grid,
            in_specs=[
                # Per-block token ids (ordinary pipelined VMEM input).
                pl.BlockSpec((r_blk, pack), lambda i: (i, 0)),
                # Whole table, constant block index -> stays resident in VMEM.
                pl.BlockSpec((p_pad, H), lambda i: (0, 0)),
            ],
            out_specs=pl.BlockSpec((r_blk, w), lambda i: (i, 0)),
        ),
        compiler_params=pltpu.CompilerParams(
            dimension_semantics=("parallel",),
        ),
    )(ids_2d, table_padded)

    # Unpack: row r holds tokens [r*pack, ..., r*pack + pack - 1] contiguously,
    # so a plain row-major reshape recovers the (n_tok, H) layout.
    out_flat = out_packed.reshape(n_pad, H)[:n_tok]
    return out_flat.reshape(B, S, H)


if __name__ == "__main__":
    # Module hyperparameters (small, consistent with the forward semantics).
    max_seq_len = 16
    hidden_size = 32
    padding_idx = 0

    # Frozen sinusoid embedding table: (max_seq_len + 1, hidden_size).
    table = get_sinusoid_encoding_table(
        n_position=max_seq_len + 1, d_hid=hidden_size, padding_idx=padding_idx
    )

    # Example input: integer position indices, shape (batch=2, seq=8).
    key = jax.random.PRNGKey(0)
    x = jax.random.randint(
        key, (2, 8), minval=0, maxval=max_seq_len + 1, dtype=jnp.int32
    )

    out = bert_position_embedding(x, table)
    out = jax.block_until_ready(out)

    # Reference: plain-JAX gather (the nn.Embedding forward).
    ref = jnp.take(table, x, axis=0)
    assert out.shape == (2, 8, hidden_size)
    np.testing.assert_allclose(np.asarray(out), np.asarray(ref), rtol=0, atol=1e-5)

    print("KERNEL_OK")
</pallas_src>

<mosaic_0001>
module attributes {stable_mosaic.version = 11 : i64} {
  func.func @_embed_kernel(%arg0: i32, %arg1: memref<8x4xi32, #tpu.memory_space<vmem>>, %arg2: memref<128x32xf32, #tpu.memory_space<vmem>>, %arg3: memref<8x128xf32, #tpu.memory_space<vmem>>) attributes {dimension_semantics = [#tpu.dimension_semantics<parallel>], iteration_bounds = array<i64: 1>, scalar_prefetch = 0 : i64, scratch_operands = 0 : i64, tpu.core_type = #tpu.core_type<tc>, window_params = [{transform_indices = @transform_0, window_bounds = array<i64: 8, 4>}, {pipeline_mode = #tpu.pipeline_mode<synchronous>, transform_indices = @transform_1, window_bounds = array<i64: 128, 32>}, {transform_indices = @transform_2, window_bounds = array<i64: 8, 128>}]} {
    %c0 = arith.constant 0 : index
    %c0_0 = arith.constant 0 : index
    %0 = vector.load %arg1[%c0, %c0_0] : memref<8x4xi32, #tpu.memory_space<vmem>>, vector<8x4xi32>
    %c0_1 = arith.constant 0 : index
    %c0_2 = arith.constant 0 : index
    %1 = vector.load %arg2[%c0_1, %c0_2] : memref<128x32xf32, #tpu.memory_space<vmem>>, vector<128x32xf32>
    %2 = tpu.iota {dimensions = array<i32: 1>} : vector<8x128xi32>
    %3 = vector.extract_strided_slice %0 {offsets = [0, 0], sizes = [8, 1], strides = [1, 1]} : vector<8x4xi32> to vector<8x1xi32>
    %4 = vector.broadcast %3 : vector<8x1xi32> to vector<8x128xi32>
    %5 = arith.cmpi eq, %2, %4 : vector<8x128xi32>
    %6 = arith.extui %5 : vector<8x128xi1> to vector<8x128xi32>
    %7 = arith.sitofp %6 : vector<8x128xi32> to vector<8x128xf32>
    %cst = arith.constant dense<0.000000e+00> : vector<8x32xf32>
    %8 = tpu.matmul %7, %1, %cst {dimension_numbers = #tpu.dot_dimension_numbers<[1], [0], [0], [1], [0, 0, 1, 1], [], []>, precision = #tpu.contract_precision<fp32>} : vector<8x128xf32>, vector<128x32xf32>, vector<8x32xf32> -> vector<8x32xf32>
    %9 = vector.extract_strided_slice %0 {offsets = [0, 1], sizes = [8, 1], strides = [1, 1]} : vector<8x4xi32> to vector<8x1xi32>
    %10 = vector.broadcast %9 : vector<8x1xi32> to vector<8x128xi32>
    %11 = arith.cmpi eq, %2, %10 : vector<8x128xi32>
    %12 = arith.extui %11 : vector<8x128xi1> to vector<8x128xi32>
    %13 = arith.sitofp %12 : vector<8x128xi32> to vector<8x128xf32>
    %cst_3 = arith.constant dense<0.000000e+00> : vector<8x32xf32>
    %14 = tpu.matmul %13, %1, %cst_3 {dimension_numbers = #tpu.dot_dimension_numbers<[1], [0], [0], [1], [0, 0, 1, 1], [], []>, precision = #tpu.contract_precision<fp32>} : vector<8x128xf32>, vector<128x32xf32>, vector<8x32xf32> -> vector<8x32xf32>
    %15 = vector.extract_strided_slice %0 {offsets = [0, 2], sizes = [8, 1], strides = [1, 1]} : vector<8x4xi32> to vector<8x1xi32>
    %16 = vector.broadcast %15 : vector<8x1xi32> to vector<8x128xi32>
    %17 = arith.cmpi eq, %2, %16 : vector<8x128xi32>
    %18 = arith.extui %17 : vector<8x128xi1> to vector<8x128xi32>
    %19 = arith.sitofp %18 : vector<8x128xi32> to vector<8x128xf32>
    %cst_4 = arith.constant dense<0.000000e+00> : vector<8x32xf32>
    %20 = tpu.matmul %19, %1, %cst_4 {dimension_numbers = #tpu.dot_dimension_numbers<[1], [0], [0], [1], [0, 0, 1, 1], [], []>, precision = #tpu.contract_precision<fp32>} : vector<8x128xf32>, vector<128x32xf32>, vector<8x32xf32> -> vector<8x32xf32>
    %21 = vector.extract_strided_slice %0 {offsets = [0, 3], sizes = [8, 1], strides = [1, 1]} : vector<8x4xi32> to vector<8x1xi32>
    %22 = vector.broadcast %21 : vector<8x1xi32> to vector<8x128xi32>
    %23 = arith.cmpi eq, %2, %22 : vector<8x128xi32>
    %24 = arith.extui %23 : vector<8x128xi1> to vector<8x128xi32>
    %25 = arith.sitofp %24 : vector<8x128xi32> to vector<8x128xf32>
    %cst_5 = arith.constant dense<0.000000e+00> : vector<8x32xf32>
    %26 = tpu.matmul %25, %1, %cst_5 {dimension_numbers = #tpu.dot_dimension_numbers<[1], [0], [0], [1], [0, 0, 1, 1], [], []>, precision = #tpu.contract_precision<fp32>} : vector<8x128xf32>, vector<128x32xf32>, vector<8x32xf32> -> vector<8x32xf32>
    %27 = tpu.concatenate %8, %14, %20, %26 in 1 : vector<8x32xf32>, vector<8x32xf32>, vector<8x32xf32>, vector<8x32xf32> -> vector<8x128xf32>
    %c0_6 = arith.constant 0 : index
    %c0_7 = arith.constant 0 : index
    %28 = vector.load %arg3[%c0_6, %c0_7] : memref<8x128xf32, #tpu.memory_space<vmem>>, vector<8x128xf32>
    tpu.vector_store %arg3[%c0_6, %c0_7], %27 {strides = array<i32>} : memref<8x128xf32, #tpu.memory_space<vmem>>, vector<8x128xf32>,
    return
  }
  func.func @transform_0(%arg0: i32) -> (i32, i32) {
    %c0_i32 = arith.constant 0 : i32
    %c0_i32_0 = arith.constant 0 : i32
    return %arg0, %c0_i32 : i32, i32
  }
  func.func @transform_1(%arg0: i32) -> (i32, i32) {
    %c0_i32 = arith.constant 0 : i32
    %c0_i32_0 = arith.constant 0 : i32
    %c0_i32_1 = arith.constant 0 : i32
    return %c0_i32, %c0_i32_0 : i32, i32
  }
  func.func @transform_2(%arg0: i32) -> (i32, i32) {
    %c0_i32 = arith.constant 0 : i32
    %c0_i32_0 = arith.constant 0 : i32
    return %arg0, %c0_i32 : i32, i32
  }
}

</mosaic_0001>

<bundles_post_ra>
// kernel: tpu_custom_call.1
= control target key start
LH: loop header
LB: loop body
LE: loop exit
PB: predicated region body
PF: predicated region fallthrough
CT: control target
= control target key end

     0   :  { %v3955_v3 = vmov 0   ;;  %v3956_v4 = vmov 0.0   ;;  %vm3957_vm0 = vmmov 0   ;;  %s5188_s0 = inlined_call_operand.vmem [shape: s32[8,4], index: 0, kind: input, shape index: {}]   ;;  %s5189_s1 = inlined_call_operand.vmem [shape: f32[128,32], index: 1, kind: input, shape index: {}]   ;;  %s5190_s2 = inlined_call_operand.hbm [shape: f32[8,128], index: 2, kind: output, shape index: {}]  }
   0x1   :  { %v3984_v0 = vld [vmem:[%s5188_s0] sm:$0xff]  ;;  %v28_v1 = vld [vmem:[%s5189_s1 + $0x78] sm:$0xff]  ;;  %v27_v2 = vld [vmem:[%s5189_s1 + $0x70] sm:$0xff]  ;;  %3927 = vset.pattern.permute.xlu0 %v3955_v3  ;;  %3111 = vmatprep.subr.mxu1 %v3956_v4 }
   0x2   :  { %v3993_v5 = vand.u32 4294901760, %v28_v1  ;;  %v3995_v6 = vand.u32 4294901760, %v27_v2  ;;  %v26_v7 = vld [vmem:[%s5189_s1 + $0x68] sm:$0xff]  ;;  %v25_v8 = vld [vmem:[%s5189_s1 + $0x60] sm:$0xff]  ;;  %v24_v9 = vld [vmem:[%s5189_s1 + $0x58] sm:$0xff]  ;;  %32 = vperm.xlu0 %3927, %v3984_v0   ;;  %3076 = vmatprep.subr.mxu0 %v3956_v4 }
   0x3   :  { %v4007_v10 = vand.u32 4294901760, %v26_v7  ;;  %v4009_v11 = vand.u32 4294901760, %v25_v8  ;;  %v4012_v12 = vand.u32 4294901760, %v24_v9  ;;  %v23_v13 = vld [vmem:[%s5189_s1 + $0x50] sm:$0xff]  ;;  %v22_v14 = vld [vmem:[%s5189_s1 + $0x48] sm:$0xff]  ;;  %v21_v15 = vld [vmem:[%s5189_s1 + $0x40] sm:$0xff]  ;;  %3143 = vmatprep.mubr.msk.f32.mxu1 %vm3957_vm0, %v3956_v4  ;;  %3108 = vmatprep.mubr.msk.f32.mxu0 %vm3957_vm0, %v3956_v4 }
   0x4   :  { %v4024_v16 = vsub.f32 %v28_v1, %v3993_v5  ;;  %v4027_v17 = vsub.f32 %v27_v2, %v3995_v6  ;;  %3077 = vmatpush3.msra.mxu0 %v3993_v5  ;;  %v4030_v18 = vand.u32 4294901760, %v23_v13  ;;  %v4032_v19 = vand.u32 4294901760, %v22_v14 }
   0x5   :  { %v4037_v20 = vsub.f32 %v26_v7, %v4007_v10  ;;  %v4040_v21 = vsub.f32 %v25_v8, %v4009_v11  ;;  %v4043_v22 = vsub.f32 %v24_v9, %v4012_v12  ;;  %3078 = vmatprep.subr.mxu0 %v3956_v4  ;;  %v4046_v23 = vand.u32 4294901760, %v21_v15 }
   0x6   :  { %v4051_v24 = vand.u32 4294901760, %v4024_v16  ;;  %v4054_v25 = vand.u32 4294901760, %v4027_v17  ;;  %v4057_v26 = vsub.f32 %v23_v13, %v4030_v18  ;;  %3079 = vmatpush3.msra.mxu0 %v3995_v6 }
   0x7   :  { %7 = vsyncpa [#allocation3], 0  ;;  %v3958_v27 = vmov 1   ;;  %v4061_v28 = vand.u32 4294901760, %v4037_v20  ;;  %v4064_v29 = vand.u32 4294901760, %v4040_v21  ;;  %3080 = vmatprep.subr.mxu0 %v3956_v4  ;;  %v4068_v30 = vsub.f32 %v22_v14, %v4032_v19  ;;  %v20_v37 = vld [vmem:[%s5189_s1 + $0x38] sm:$0xff] }
   0x8   :  { %3928 = vset.pattern.permute.xlu0 %v3958_v27  ;;  %v132_v31 = vsub.f32 %v4024_v16, %v4051_v24  ;;  %v139_v32 = vsub.f32 %v4027_v17, %v4054_v25  ;;  %v4076_v33 = vand.u32 4294901760, %v4043_v22  ;;  %3081 = vmatpush3.msra.mxu0 %v4007_v10  ;;  %v4082_v35 = vand.u32 4294901760, %v4057_v26  ;;  %v19_v38 = vld [vmem:[%s5189_s1 + $0x30] sm:$0xff]  ;;  %v18_v42 = vld [vmem:[%s5189_s1 + $0x28] sm:$0xff]  ;;  %v17_v44 = vld [vmem:[%s5189_s1 + $0x20] sm:$0xff]  ;;  %s3963_s16 = smov 64  }
   0x9   :  { %679 = vperm.xlu0 %3928, %v3984_v0   ;;  %v146_v34 = vsub.f32 %v4037_v20, %v4061_v28  ;;  %3082 = vmatprep.subr.mxu0 %v3956_v4  ;;  %v4086_v36 = vsub.f32 %v21_v15, %v4046_v23  ;;  %v153_v41 = vsub.f32 %v4040_v21, %v4064_v29  ;;  %v4105_v43 = vand.u32 4294901760, %v4068_v30  ;;  %v16_v52 = vld [vmem:[%s5189_s1 + $0x18] sm:$0xff]  ;;  %v15_v58 = vld [vmem:[%s5189_s1 + $0x10] sm:$0xff]  ;;  %v14_v1 = vld [vmem:[%s5189_s1 + $0x8] sm:$0xff]  ;;  %s3964_s17 = smov 96   ;;  %s3965_s18 = smov [#allocation2]  }
   0xa   :  { %v4094_v39 = vand.u32 4294901760, %v132_v31  ;;  %v4096_v40 = vand.u32 4294901760, %v139_v32  ;;  %3083 = vmatpush3.msra.mxu0 %v4009_v11  ;;  %v160_v46 = vsub.f32 %v4043_v22, %v4076_v33  ;;  %v4116_v47 = vand.u32 4294901760, %v20_v37  ;;  %v13_v13 = vld [vmem:[%s5189_s1] sm:$0xff]  ;;  %s2644_s19 = sshll.u32 %s3965_s18, 4  ;;  %s2645_s19 = int_to_ptr.vmem [resolvable:$true] %s2644_s19 }
   0xb   :  { %3084 = vmatprep.subr.mxu0 %v3956_v4  ;;  %v4112_v45 = vand.u32 4294901760, %v146_v34  ;;  %v4119_v48 = vand.u32 4294901760, %v19_v38  ;;  %v167_v49 = vsub.f32 %v4057_v26, %v4082_v35  ;;  %v4125_v50 = vand.u32 4294901760, %v4086_v36  ;;  %s3933_s20 = scalar_lea.vmem %s2645_s19, 128  ;;  %p3938_p1 = scmp.lt.s32.totalorder %s2645_s19, %s2645_s19 }
   0xc   :  { %3112 = vmatpush3.msra.mxu1 %v4094_v39  ;;  %3085 = vmatpush3.msra.mxu0 %v4012_v12  ;;  %v4128_v51 = vand.u32 4294901760, %v18_v42  ;;  %v4134_v53 = vand.u32 4294901760, %v153_v41  ;;  %v4137_v54 = vsub.f32 %v20_v37, %v4116_v47  ;;  %v4143_v56 = vand.u32 4294901760, %v17_v44  ;;  %p3934_p0 = scmp.ne.s32.totalorder %s2645_s19, %s3933_s20  ;;  %p3939_p2 = scmp.lt.s32.totalorder %s3933_s20, %s3933_s20 }
   0xd   :  { %3113 = vmatprep.subr.mxu1 %v3956_v4  ;;  %3086 = vmatprep.subr.mxu0 %v3956_v4  ;;  %v4140_v55 = vsub.f32 %v19_v38, %v4119_v48  ;;  %v174_v57 = vsub.f32 %v4068_v30, %v4105_v43  ;;  %v4153_v59 = vand.u32 4294901760, %v160_v46  ;;  %v4162_v62 = vand.u32 4294901760, %v16_v52 }
   0xe   :  { %3114 = vmatpush3.msra.mxu1 %v4096_v40  ;;  %5219 = vst [vmem:[#allocation5_spill] sm:$0xff] %v4137_v54  ;;  %3087 = vmatpush3.msra.mxu0 %v4030_v18  ;;  %v4156_v60 = vand.u32 4294901760, %v4137_v54  ;;  %v4159_v61 = vsub.f32 %v18_v42, %v4128_v51  ;;  %v181_v63 = vsub.f32 %v4086_v36, %v4125_v50  ;;  %v4172_v2 = vand.u32 4294901760, %v167_v49  ;;  %p3940_p3 = por %p3939_p2, %p3938_p1 }
   0xf   :  { %5220 = vst [vmem:[#allocation6_spill] sm:$0xff] %v4140_v55  ;;  %3115 = vmatprep.subr.mxu1 %v3956_v4  ;;  %3088 = vmatprep.subr.mxu0 %v3956_v4  ;;  %v4175_v3 = vand.u32 4294901760, %v4140_v55  ;;  %v4178_v7 = vsub.f32 %v17_v44, %v4143_v56  ;;  %v4181_v8 = vand.u32 4294901760, %v15_v58  ;;  %v4184_v9 = vand.u32 4294901760, %v174_v57 }
  0x10   :  { %3116 = vmatpush3.msra.mxu1 %v4112_v45  ;;  %3089 = vmatpush3.msra.mxu0 %v4032_v19  ;;  %5221 = vst [vmem:[#allocation7_spill] sm:$0xff] %v4172_v2  ;;  %v188_v14 = vsub.f32 %v4137_v54, %v4156_v60  ;;  %v4194_v15 = vand.u32 4294901760, %v4159_v61  ;;  %v4197_v27 = vsub.f32 %v16_v52, %v4162_v62  ;;  %v4200_v31 = vand.u32 4294901760, %v14_v1  ;;  %p3941_p4 = pnand %p3940_p3, %p3934_p0 }
  0x11   :  { %3117 = vmatprep.subr.mxu1 %v3956_v4  ;;  %3090 = vmatprep.subr.mxu0 %v3956_v4  ;;  %5222 = vst [vmem:[#allocation8_spill] sm:$0xff] %v4184_v9  ;;  %v4203_v32 = vand.u32 4294901760, %v181_v63  ;;  %v195_v34 = vsub.f32 %v4140_v55, %v4175_v3  ;;  %v4210_v37 = vand.u32 4294901760, %v4178_v7  ;;  %v4213_v38 = vsub.f32 %v15_v58, %v4181_v8 }
  0x12   :  { %3118 = vmatpush3.msra.mxu1 %v4134_v53  ;;  %3091 = vmatpush3.msra.mxu0 %v4046_v23  ;;  %v4216_v41 = vand.u32 4294901760, %v13_v13  ;;  %v4221_v42 = vand.u32 4294901760, %v188_v14  ;;  %v202_v44 = vsub.f32 %v4159_v61, %v4194_v15  ;;  %v4226_v46 = vand.u32 4294901760, %v4197_v27 }
  0x13   :  { %3119 = vmatprep.subr.mxu1 %v3956_v4  ;;  %3092 = vmatprep.subr.mxu0 %v3956_v4  ;;  %5223 = vst [vmem:[#allocation9_spill] sm:$0xff] %v4203_v32  ;;  %v4229_v49 = vsub.f32 %v14_v1, %v4200_v31  ;;  %v4235_v52 = vand.u32 4294901760, %v195_v34  ;;  %v209_v57 = vsub.f32 %v4178_v7, %v4210_v37  ;;  %v4240_v58 = vand.u32 4294901760, %v4213_v38 }
  0x14   :  { %3120 = vmatpush3.msra.mxu1 %v4153_v59  ;;  %3093 = vmatpush3.msra.mxu0 %v4116_v47  ;;  %5224 = vst [vmem:[#allocation10_spill] sm:$0xff] %v4221_v42  ;;  %v4243_v63 = vsub.f32 %v13_v13, %v4216_v41  ;;  %v4249_v1 = vand.u32 4294901760, %v202_v44  ;;  %v216_v14 = vsub.f32 %v4197_v27, %v4226_v46  ;;  %vm2631_vm5 = vcmask 261120  }
  0x15   :  { %3121 = vmatprep.subr.mxu1 %v3956_v4  ;;  %3094 = vmatprep.subr.mxu0 %v3956_v4  ;;  %5225 = vst [vmem:[#allocation11_spill] sm:$0xff] %v4235_v52  ;;  %v4254_v34 = vand.u32 4294901760, %v4229_v49  ;;  %v4260_v13 = vand.u32 4294901760, %v209_v57  ;;  %v223_v44 = vsub.f32 %v4213_v38, %v4240_v58  ;;  %vm2633_vm6 = vcmask 523264  }
  0x16   :  { %3122 = vmatpush3.msra.mxu1 %v4172_v2  ;;  %3095 = vmatpush3.msra.mxu0 %v4119_v48  ;;  %5226 = vst [vmem:[#allocation12_spill] sm:$0xff] %v4249_v1  ;;  %vm2635_vm7 = vcmask 785408  }
  0x17   :  { %3123 = vmatprep.subr.mxu1 %v3956_v4  ;;  %3096 = vmatprep.subr.mxu0 %v3956_v4  ;;  %5227 = vst [vmem:[#allocation13_spill] sm:$0xff] %v4260_v13  ;;  %v230_v57 = vsub.f32 %v4229_v49, %v4254_v34 }
  0x18   :  { %3124 = vmatpush3.msra.mxu1 %v4184_v9  ;;  %3097 = vmatpush3.msra.mxu0 %v4128_v51 }
  0x19   :  { %3125 = vmatprep.subr.mxu1 %v3956_v4  ;;  %3098 = vmatprep.subr.mxu0 %v3956_v4 }
  0x1a   :  { %3126 = vmatpush3.msra.mxu1 %v4203_v32  ;;  %3099 = vmatpush3.msra.mxu0 %v4143_v56  ;;  %v4271_v32 = vand.u32 4294901760, %v216_v14  ;;  %v4287_v14 = vand.u32 4294901760, %v230_v57  ;;  %v29_v57 = vlaneseq }
  0x1b   :  { %3127 = vmatprep.subr.mxu1 %v3956_v4  ;;  %3100 = vmatprep.subr.mxu0 %v3956_v4 }
  0x1c   :  { %3128 = vmatpush3.msra.mxu1 %v4221_v42  ;;  %3101 = vmatpush3.msra.mxu0 %v4162_v62  ;;  %v4265_v42 = vand.u32 4294901760, %v4243_v63  ;;  %5228 = vst [vmem:[#allocation14_spill] sm:$0xff] %v4271_v32  ;;  %5230 = vst [vmem:[#allocation16_spill] sm:$0xff] %v4287_v14 }
  0x1d   :  { %3129 = vmatprep.subr.mxu1 %v3956_v4  ;;  %3102 = vmatprep.subr.mxu0 %v3956_v4 }
  0x1e   :  { %3130 = vmatpush3.msra.mxu1 %v4235_v52  ;;  %3103 = vmatpush3.msra.mxu0 %v4181_v8  ;;  %v4279_v52 = vand.u32 4294901760, %v223_v44  ;;  %v237_v9 = vsub.f32 %v4243_v63, %v4265_v42  ;;  %v3959_v44 = vmov 2  }
  0x1f   :  { %3131 = vmatprep.subr.mxu1 %v3956_v4  ;;  %3104 = vmatprep.subr.mxu0 %v3956_v4 }
  0x20   :  { %3132 = vmatpush3.msra.mxu1 %v4249_v1  ;;  %3105 = vmatpush3.msra.mxu0 %v4200_v31  ;;  %5229 = vst [vmem:[#allocation15_spill] sm:$0xff] %v4279_v52 }
  0x21   :  { %3133 = vmatprep.subr.mxu1 %v3956_v4  ;;  %3106 = vmatprep.subr.mxu0 %v3956_v4 }
  0x22   :  { %3134 = vmatpush3.msra.mxu1 %v4260_v13  ;;  %3107 = vmatpush3.msra.mxu0 %v4216_v41  ;;  %v4291_v13 = vand.u32 4294901760, %v237_v9 }
  0x23   :  { %3135 = vmatprep.subr.mxu1 %v3956_v4  ;;  %3146 = vmatprep.subr.mxu0 %v3956_v4 }
  0x24   :  { %3136 = vmatpush3.msra.mxu1 %v4271_v32  ;;  %5231 = vst [vmem:[#allocation17_spill] sm:$0xff] %v4291_v13  ;;  %3929 = vset.pattern.permute.xlu1 %v3959_v44  ;;  %v4299_v32 = vand.u32 127, %v29_v57 }
  0x25   :  { %3137 = vmatprep.subr.mxu1 %v3956_v4  ;;  %1326 = vperm.xlu1 %3929, %v3984_v0  }
  0x26   :  { %3138 = vmatpush3.msra.mxu1 %v4279_v52 }
  0x27   :  { %3139 = vmatprep.subr.mxu1 %v3956_v4 }
  0x28   :  { %3140 = vmatpush3.msra.mxu1 %v4287_v14 }
  0x29   :  { %3141 = vmatprep.subr.mxu1 %v3956_v4 }
  0x2a   :  { %3142 = vmatpush3.msra.mxu1 %v4291_v13  ;;  %v5207_v13 = vmov 1.0  }
  0x2b   :  { %3181 = vmatprep.subr.mxu1 %v3956_v4 }
  0x7d   :  { %v4301_v52 = vpop.permute.xlu0 %32 }
  0x7e   :  { %vm34_vm1 = vcmp.eq.s32.totalorder %v4299_v32, %v4301_v52  ;;  %v5232_v52 = vld [vmem:[#allocation8_spill] sm:$0xff] }
  0x7f   :  { %v2652_v9 = vsel %vm34_vm1, 1.0, %v3956_v4  ;;  %3144 = vmatmul.mubr.msk.f32.vlgmr.msra.gmra.mxu1 %vm34_vm1, %v5207_v13 }
  0x80   :  { %v4313_v0 = vsub.f32 %v2652_v9, %v2652_v9  ;;  %3182 = vmatpush3.msra.mxu1 %v3993_v5  ;;  %3213 = vmatprep.mubr.msk.f32.mxu1 %vm3957_vm0, %v3956_v4 }
  0x81   :  { %3183 = vmatprep.subr.mxu1 %v3956_v4 }
  0x82   :  { %3184 = vmatpush3.msra.mxu1 %v3995_v6  ;;  %v120_v44 = vand.u32 4294901760, %v4313_v0 }
  0x83   :  { %3185 = vmatprep.subr.mxu1 %v3956_v4 }
  0x84   :  { %3186 = vmatpush3.msra.mxu1 %v4007_v10  ;;  %v121_v57 = vsub.f32 %v4313_v0, %v120_v44 }
  0x85   :  { %3187 = vmatprep.subr.mxu1 %v3956_v4 }
  0x86   :  { %3188 = vmatpush3.msra.mxu1 %v4009_v11  ;;  %v122_v9 = vand.u32 4294901760, %v121_v57  ;;  %v4488_v57 = vpop.permute.xlu0 %679 }
  0x87   :  { %3189 = vmatprep.subr.mxu1 %v3956_v4  ;;  %vm681_vm2 = vcmp.eq.s32.totalorder %v4299_v32, %v4488_v57 }
  0x88   :  { %3190 = vmatpush3.msra.mxu1 %v4012_v12  ;;  %3109 = vmatmul.mubr.f32.vlgmr.msra.gmra.mxu0 %v122_v9  ;;  %v5235_v9 = vld [vmem:[#allocation11_spill] sm:$0xff] }
  0x89   :  { %3147 = vmatpush3.msra.mxu0 %v4024_v16  ;;  %3191 = vmatprep.subr.mxu1 %v3956_v4 }
  0x8a   :  { %3148 = vmatprep.subr.mxu0 %v3956_v4  ;;  %3192 = vmatpush3.msra.mxu1 %v4030_v18 }
  0x8b   :  { %3149 = vmatpush3.msra.mxu0 %v4027_v17  ;;  %3193 = vmatprep.subr.mxu1 %v3956_v4 }
  0x8c   :  { %3150 = vmatprep.subr.mxu0 %v3956_v4  ;;  %3194 = vmatpush3.msra.mxu1 %v4032_v19 }
  0x8d   :  { %3151 = vmatpush3.msra.mxu0 %v4037_v20  ;;  %3195 = vmatprep.subr.mxu1 %v3956_v4 }
  0x8e   :  { %3152 = vmatprep.subr.mxu0 %v3956_v4  ;;  %3196 = vmatpush3.msra.mxu1 %v4046_v23 }
  0x8f   :  { %3153 = vmatpush3.msra.mxu0 %v4040_v21  ;;  %3197 = vmatprep.subr.mxu1 %v3956_v4 }
  0x90   :  { %3154 = vmatprep.subr.mxu0 %v3956_v4  ;;  %3198 = vmatpush3.msra.mxu1 %v4116_v47 }
  0x91   :  { %3155 = vmatpush3.msra.mxu0 %v4043_v22  ;;  %3199 = vmatprep.subr.mxu1 %v3956_v4 }
  0x92   :  { %3156 = vmatprep.subr.mxu0 %v3956_v4  ;;  %3200 = vmatpush3.msra.mxu1 %v4119_v48 }
  0x93   :  { %3157 = vmatpush3.msra.mxu0 %v4057_v26  ;;  %3201 = vmatprep.subr.mxu1 %v3956_v4 }
  0x94   :  { %3158 = vmatprep.subr.mxu0 %v3956_v4  ;;  %3202 = vmatpush3.msra.mxu1 %v4128_v51 }
  0x95   :  { %3159 = vmatpush3.msra.mxu0 %v4068_v30  ;;  %3203 = vmatprep.subr.mxu1 %v3956_v4 }
  0x96   :  { %3160 = vmatprep.subr.mxu0 %v3956_v4  ;;  %3204 = vmatpush3.msra.mxu1 %v4143_v56 }
  0x97   :  { %3161 = vmatpush3.msra.mxu0 %v4086_v36  ;;  %3205 = vmatprep.subr.mxu1 %v3956_v4 }
  0x98   :  { %3162 = vmatprep.subr.mxu0 %v3956_v4  ;;  %3206 = vmatpush3.msra.mxu1 %v4162_v62 }
  0x99   :  { %3163 = vmatpush3.msra.mxu0 %v4137_v54  ;;  %3207 = vmatprep.subr.mxu1 %v3956_v4 }
  0x9a   :  { %3164 = vmatprep.subr.mxu0 %v3956_v4  ;;  %3208 = vmatpush3.msra.mxu1 %v4181_v8 }
  0x9b   :  { %3165 = vmatpush3.msra.mxu0 %v4140_v55  ;;  %3209 = vmatprep.subr.mxu1 %v3956_v4 }
  0x9c   :  { %3166 = vmatprep.subr.mxu0 %v3956_v4  ;;  %3210 = vmatpush3.msra.mxu1 %v4200_v31 }
  0x9d   :  { %3167 = vmatpush3.msra.mxu0 %v4159_v61  ;;  %3211 = vmatprep.subr.mxu1 %v3956_v4 }
  0x9e   :  { %3168 = vmatprep.subr.mxu0 %v3956_v4  ;;  %3212 = vmatpush3.msra.mxu1 %v4216_v41 }
  0x9f   :  { %3169 = vmatpush3.msra.mxu0 %v4178_v7  ;;  %3214 = vmatmul.mubr.f32.vlgmr.msra.gmra.mxu1 %v120_v44  ;;  %v5234_v44 = vld [vmem:[#allocation10_spill] sm:$0xff] }
  0xa0   :  { %3251 = vmatprep.subr.mxu1 %v3956_v4  ;;  %3170 = vmatprep.subr.mxu0 %v3956_v4  ;;  %v4725_v57 = vpop.permute.xlu1 %1326 }
  0xa1   :  { %3252 = vmatpush3.msra.mxu1 %v3993_v5  ;;  %3171 = vmatpush3.msra.mxu0 %v4197_v27  ;;  %vm1328_vm3 = vcmp.eq.s32.totalorder %v4299_v32, %v4725_v57  ;;  %v5256_v57 = vld [vmem:[#allocation12_spill] sm:$0xff] }
  0xa2   :  { %3253 = vmatprep.subr.mxu1 %v3956_v4  ;;  %3172 = vmatprep.subr.mxu0 %v3956_v4 }
  0xa3   :  { %3254 = vmatpush3.msra.mxu1 %v3995_v6  ;;  %3173 = vmatpush3.msra.mxu0 %v4213_v38 }
  0xa4   :  { %3255 = vmatprep.subr.mxu1 %v3956_v4  ;;  %3174 = vmatprep.subr.mxu0 %v3956_v4 }
  0xa5   :  { %3256 = vmatpush3.msra.mxu1 %v4007_v10  ;;  %3175 = vmatpush3.msra.mxu0 %v4229_v49 }
  0xa6   :  { %3257 = vmatprep.subr.mxu1 %v3956_v4  ;;  %3176 = vmatprep.subr.mxu0 %v3956_v4 }
  0xa7   :  { %3258 = vmatpush3.msra.mxu1 %v4009_v11  ;;  %3177 = vmatpush3.msra.mxu0 %v4243_v63 }
  0xa8   :  { %3178 = vmatprep.mubr.msk.f32.mxu0 %vm3957_vm0, %v3956_v4  ;;  %3259 = vmatprep.subr.mxu1 %v3956_v4 }
  0xa9   :  { %3179 = vmatmul.mubr.f32.vlgmr.msra.gmra.mxu0 %v4313_v0  ;;  %3216 = vmatprep.subr.mxu0 %v3956_v4  ;;  %v5233_v0 = vld [vmem:[#allocation9_spill] sm:$0xff] }
  0xaa   :  { %3260 = vmatpush3.msra.mxu1 %v4012_v12  ;;  %3217 = vmatpush3.msra.mxu0 %v4051_v24 }
  0xab   :  { %3261 = vmatprep.subr.mxu1 %v3956_v4  ;;  %3218 = vmatprep.subr.mxu0 %v3956_v4 }
  0xac   :  { %3262 = vmatpush3.msra.mxu1 %v4030_v18  ;;  %3219 = vmatpush3.msra.mxu0 %v4054_v25 }
  0xad   :  { %3263 = vmatprep.subr.mxu1 %v3956_v4  ;;  %3220 = vmatprep.subr.mxu0 %v3956_v4 }
  0xae   :  { %3264 = vmatpush3.msra.mxu1 %v4032_v19  ;;  %3221 = vmatpush3.msra.mxu0 %v4061_v28 }
  0xaf   :  { %3265 = vmatprep.subr.mxu1 %v3956_v4  ;;  %3222 = vmatprep.subr.mxu0 %v3956_v4 }
  0xb0   :  { %3266 = vmatpush3.msra.mxu1 %v4046_v23  ;;  %3223 = vmatpush3.msra.mxu0 %v4064_v29 }
  0xb1   :  { %3267 = vmatprep.subr.mxu1 %v3956_v4  ;;  %3224 = vmatprep.subr.mxu0 %v3956_v4 }
  0xb2   :  { %3268 = vmatpush3.msra.mxu1 %v4116_v47  ;;  %3225 = vmatpush3.msra.mxu0 %v4076_v33 }
  0xb3   :  { %3269 = vmatprep.subr.mxu1 %v3956_v4  ;;  %3226 = vmatprep.subr.mxu0 %v3956_v4 }
  0xb4   :  { %3270 = vmatpush3.msra.mxu1 %v4119_v48  ;;  %3227 = vmatpush3.msra.mxu0 %v4082_v35 }
  0xb5   :  { %3271 = vmatprep.subr.mxu1 %v3956_v4  ;;  %3228 = vmatprep.subr.mxu0 %v3956_v4 }
  0xb6   :  { %3272 = vmatpush3.msra.mxu1 %v4128_v51  ;;  %3229 = vmatpush3.msra.mxu0 %v4105_v43 }
  0xb7   :  { %3273 = vmatprep.subr.mxu1 %v3956_v4  ;;  %3230 = vmatprep.subr.mxu0 %v3956_v4 }
  0xb8   :  { %3274 = vmatpush3.msra.mxu1 %v4143_v56  ;;  %3231 = vmatpush3.msra.mxu0 %v4125_v50 }
  0xb9   :  { %3275 = vmatprep.subr.mxu1 %v3956_v4  ;;  %3232 = vmatprep.subr.mxu0 %v3956_v4 }
  0xba   :  { %3276 = vmatpush3.msra.mxu1 %v4162_v62  ;;  %3233 = vmatpush3.msra.mxu0 %v4156_v60 }
  0xbb   :  { %3277 = vmatprep.subr.mxu1 %v3956_v4  ;;  %3234 = vmatprep.subr.mxu0 %v3956_v4 }
  0xbc   :  { %3278 = vmatpush3.msra.mxu1 %v4181_v8  ;;  %3235 = vmatpush3.msra.mxu0 %v4175_v3 }
  0xbd   :  { %3279 = vmatprep.subr.mxu1 %v3956_v4  ;;  %3236 = vmatprep.subr.mxu0 %v3956_v4 }
  0xbe   :  { %3280 = vmatpush3.msra.mxu1 %v4200_v31  ;;  %3237 = vmatpush3.msra.mxu0 %v4194_v15 }
  0xbf   :  { %3281 = vmatprep.subr.mxu1 %v3956_v4  ;;  %3238 = vmatprep.subr.mxu0 %v3956_v4 }
  0xc0   :  { %3282 = vmatpush3.msra.mxu1 %v4216_v41  ;;  %3283 = vmatprep.mubr.msk.f32.mxu1 %vm3957_vm0, %v3956_v4 }
  0xc1   :  { %3239 = vmatpush3.msra.mxu0 %v4210_v37  ;;  %3284 = vmatmul.mubr.msk.f32.vlgmr.msra.gmra.mxu1 %vm34_vm1, %v5207_v13 }
  0xc2   :  { %3321 = vmatprep.subr.mxu1 %v3956_v4  ;;  %3240 = vmatprep.subr.mxu0 %v3956_v4 }
  0xc3   :  { %3322 = vmatpush3.msra.mxu1 %v4094_v39  ;;  %3241 = vmatpush3.msra.mxu0 %v4226_v46 }
  0xc4   :  { %3323 = vmatprep.subr.mxu1 %v3956_v4  ;;  %3242 = vmatprep.subr.mxu0 %v3956_v4 }
  0xc5   :  { %3324 = vmatpush3.msra.mxu1 %v4096_v40  ;;  %3243 = vmatpush3.msra.mxu0 %v4240_v58 }
  0xc6   :  { %3325 = vmatprep.subr.mxu1 %v3956_v4  ;;  %3244 = vmatprep.subr.mxu0 %v3956_v4 }
  0xc7   :  { %3326 = vmatpush3.msra.mxu1 %v4112_v45  ;;  %3245 = vmatpush3.msra.mxu0 %v4254_v34 }
  0xc8   :  { %3327 = vmatprep.subr.mxu1 %v3956_v4  ;;  %3246 = vmatprep.subr.mxu0 %v3956_v4 }
  0xc9   :  { %3328 = vmatpush3.msra.mxu1 %v4134_v53  ;;  %3247 = vmatpush3.msra.mxu0 %v4265_v42 }
  0xca   :  { %3248 = vmatprep.mubr.msk.f32.mxu0 %vm3957_vm0, %v3956_v4  ;;  %3329 = vmatprep.subr.mxu1 %v3956_v4 }
  0xcb   :  { %3249 = vmatmul.mubr.msk.f32.vlgmr.msra.gmra.mxu0 %vm34_vm1, %v5207_v13  ;;  %3286 = vmatprep.subr.mxu0 %v3956_v4  ;;  %v5236_v13 = vld [vmem:[#allocation13_spill] sm:$0xff] }
  0xcc   :  { %3330 = vmatpush3.msra.mxu1 %v4153_v59  ;;  %3287 = vmatpush3.msra.mxu0 %v3993_v5 }
  0xcd   :  { %3331 = vmatprep.subr.mxu1 %v3956_v4  ;;  %3288 = vmatprep.subr.mxu0 %v3956_v4 }
  0xce   :  { %3332 = vmatpush3.msra.mxu1 %v4172_v2  ;;  %3289 = vmatpush3.msra.mxu0 %v3995_v6 }
  0xcf   :  { %3333 = vmatprep.subr.mxu1 %v3956_v4  ;;  %3290 = vmatprep.subr.mxu0 %v3956_v4 }
  0xd0   :  { %3334 = vmatpush3.msra.mxu1 %v5232_v52  ;;  %3291 = vmatpush3.msra.mxu0 %v4007_v10 }
  0xd1   :  { %3335 = vmatprep.subr.mxu1 %v3956_v4  ;;  %3292 = vmatprep.subr.mxu0 %v3956_v4 }
  0xd2   :  { %3336 = vmatpush3.msra.mxu1 %v5233_v0  ;;  %3293 = vmatpush3.msra.mxu0 %v4009_v11 }
  0xd3   :  { %3337 = vmatprep.subr.mxu1 %v3956_v4  ;;  %3294 = vmatprep.subr.mxu0 %v3956_v4 }
  0xd4   :  { %3338 = vmatpush3.msra.mxu1 %v5234_v44  ;;  %3295 = vmatpush3.msra.mxu0 %v4012_v12  ;;  %v5238_v44 = vld [vmem:[#allocation15_spill] sm:$0xff] }
  0xd5   :  { %3339 = vmatprep.subr.mxu1 %v3956_v4  ;;  %3296 = vmatprep.subr.mxu0 %v3956_v4 }
  0xd6   :  { %3340 = vmatpush3.msra.mxu1 %v5235_v9  ;;  %3297 = vmatpush3.msra.mxu0 %v4030_v18  ;;  %v2656_v9 = vsel %vm681_vm2, 1.0, %v3956_v4 }
  0xd7   :  { %3341 = vmatprep.subr.mxu1 %v3956_v4  ;;  %3298 = vmatprep.subr.mxu0 %v3956_v4 }
  0xd8   :  { %3342 = vmatpush3.msra.mxu1 %v4249_v1  ;;  %3299 = vmatpush3.msra.mxu0 %v4032_v19  ;;  %v5237_v1 = vld [vmem:[#allocation14_spill] sm:$0xff] }
  0xd9   :  { %3343 = vmatprep.subr.mxu1 %v3956_v4  ;;  %3300 = vmatprep.subr.mxu0 %v3956_v4 }
  0xda   :  { %3344 = vmatpush3.msra.mxu1 %v5236_v13  ;;  %3301 = vmatpush3.msra.mxu0 %v4046_v23  ;;  %v4514_v13 = vsub.f32 %v2656_v9, %v2656_v9  ;;  %v5239_v9 = vld [vmem:[#allocation17_spill] sm:$0xff] }
  0xdb   :  { %3345 = vmatprep.subr.mxu1 %v3956_v4  ;;  %3302 = vmatprep.subr.mxu0 %v3956_v4 }
  0xdc   :  { %3346 = vmatpush3.msra.mxu1 %v5237_v1  ;;  %3303 = vmatpush3.msra.mxu0 %v4116_v47  ;;  %v767_v1 = vand.u32 4294901760, %v4514_v13 }
  0xdd   :  { %3347 = vmatprep.subr.mxu1 %v3956_v4  ;;  %3304 = vmatprep.subr.mxu0 %v3956_v4 }
  0xde   :  { %3348 = vmatpush3.msra.mxu1 %v5238_v44  ;;  %3305 = vmatpush3.msra.mxu0 %v4119_v48  ;;  %v5240_v44 = vmov 1.0  }
  0xdf   :  { %3349 = vmatprep.subr.mxu1 %v3956_v4  ;;  %3306 = vmatprep.subr.mxu0 %v3956_v4 }
  0xe0   :  { %3350 = vmatpush3.msra.mxu1 %v4287_v14  ;;  %3307 = vmatpush3.msra.mxu0 %v4128_v51 }
  0xe1   :  { %3351 = vmatprep.subr.mxu1 %v3956_v4  ;;  %3308 = vmatprep.subr.mxu0 %v3956_v4 }
  0xe2   :  { %3352 = vmatpush3.msra.mxu1 %v5239_v9  ;;  %3353 = vmatprep.mubr.msk.f32.mxu1 %vm3957_vm0, %v3956_v4  ;;  %v768_v9 = vsub.f32 %v4514_v13, %v767_v1 }
  0xe3   :  { %3309 = vmatpush3.msra.mxu0 %v4143_v56  ;;  %3354 = vmatmul.mubr.msk.f32.vlgmr.msra.gmra.mxu1 %vm681_vm2, %v5240_v44 }
  0xe4   :  { %3391 = vmatprep.subr.mxu1 %v3956_v4  ;;  %3310 = vmatprep.subr.mxu0 %v3956_v4  ;;  %v769_v14 = vand.u32 4294901760, %v768_v9  ;;  %v5242_v9 = vld [vmem:[#allocation11_spill] sm:$0xff] }
  0xe5   :  { %3392 = vmatpush3.msra.mxu1 %v3993_v5  ;;  %3311 = vmatpush3.msra.mxu0 %v4162_v62 }
  0xe6   :  { %3393 = vmatprep.subr.mxu1 %v3956_v4  ;;  %3312 = vmatprep.subr.mxu0 %v3956_v4 }
  0xe7   :  { %3394 = vmatpush3.msra.mxu1 %v3995_v6  ;;  %3313 = vmatpush3.msra.mxu0 %v4181_v8 }
  0xe8   :  { %3395 = vmatprep.subr.mxu1 %v3956_v4  ;;  %3314 = vmatprep.subr.mxu0 %v3956_v4 }
  0xe9   :  { %3396 = vmatpush3.msra.mxu1 %v4007_v10  ;;  %3315 = vmatpush3.msra.mxu0 %v4200_v31 }
  0xea   :  { %3397 = vmatprep.subr.mxu1 %v3956_v4  ;;  %3316 = vmatprep.subr.mxu0 %v3956_v4 }
  0xeb   :  { %3398 = vmatpush3.msra.mxu1 %v4009_v11  ;;  %3317 = vmatpush3.msra.mxu0 %v4216_v41 }
  0xec   :  { %3318 = vmatprep.mubr.msk.f32.mxu0 %vm3957_vm0, %v3956_v4  ;;  %3399 = vmatprep.subr.mxu1 %v3956_v4 }
  0xed   :  { %3319 = vmatmul.mubr.f32.vlgmr.msra.gmra.mxu0 %v769_v14  ;;  %3356 = vmatprep.subr.mxu0 %v3956_v4  ;;  %v5241_v14 = vld [vmem:[#allocation10_spill] sm:$0xff] }
  0xee   :  { %3400 = vmatpush3.msra.mxu1 %v4012_v12  ;;  %3357 = vmatpush3.msra.mxu0 %v4024_v16 }
  0xef   :  { %3401 = vmatprep.subr.mxu1 %v3956_v4  ;;  %3358 = vmatprep.subr.mxu0 %v3956_v4 }
  0xf0   :  { %3402 = vmatpush3.msra.mxu1 %v4030_v18  ;;  %3359 = vmatpush3.msra.mxu0 %v4027_v17 }
  0xf1   :  { %3403 = vmatprep.subr.mxu1 %v3956_v4  ;;  %3360 = vmatprep.subr.mxu0 %v3956_v4 }
  0xf2   :  { %3404 = vmatpush3.msra.mxu1 %v4032_v19  ;;  %3361 = vmatpush3.msra.mxu0 %v4037_v20 }
  0xf3   :  { %3405 = vmatprep.subr.mxu1 %v3956_v4  ;;  %3362 = vmatprep.subr.mxu0 %v3956_v4 }
  0xf4   :  { %3406 = vmatpush3.msra.mxu1 %v4046_v23  ;;  %3363 = vmatpush3.msra.mxu0 %v4040_v21 }
  0xf5   :  { %3407 = vmatprep.subr.mxu1 %v3956_v4  ;;  %3364 = vmatprep.subr.mxu0 %v3956_v4 }
  0xf6   :  { %3408 = vmatpush3.msra.mxu1 %v4116_v47  ;;  %3365 = vmatpush3.msra.mxu0 %v4043_v22 }
  0xf7   :  { %3409 = vmatprep.subr.mxu1 %v3956_v4  ;;  %3366 = vmatprep.subr.mxu0 %v3956_v4 }
  0xf8   :  { %3410 = vmatpush3.msra.mxu1 %v4119_v48  ;;  %3367 = vmatpush3.msra.mxu0 %v4057_v26 }
  0xf9   :  { %3411 = vmatprep.subr.mxu1 %v3956_v4  ;;  %3368 = vmatprep.subr.mxu0 %v3956_v4 }
  0xfa   :  { %3412 = vmatpush3.msra.mxu1 %v4128_v51  ;;  %3369 = vmatpush3.msra.mxu0 %v4068_v30 }
  0xfb   :  { %3413 = vmatprep.subr.mxu1 %v3956_v4  ;;  %3370 = vmatprep.subr.mxu0 %v3956_v4 }
  0xfc   :  { %3414 = vmatpush3.msra.mxu1 %v4143_v56  ;;  %3371 = vmatpush3.msra.mxu0 %v4086_v36 }
  0xfd   :  { %3415 = vmatprep.subr.mxu1 %v3956_v4  ;;  %3372 = vmatprep.subr.mxu0 %v3956_v4 }
  0xfe   :  { %3416 = vmatpush3.msra.mxu1 %v4162_v62  ;;  %3373 = vmatpush3.msra.mxu0 %v4137_v54 }
  0xff   :  { %3417 = vmatprep.subr.mxu1 %v3956_v4  ;;  %3374 = vmatprep.subr.mxu0 %v3956_v4 }
 0x100   :  { %3418 = vmatpush3.msra.mxu1 %v4181_v8  ;;  %3375 = vmatpush3.msra.mxu0 %v4140_v55 }
 0x101   :  { %3419 = vmatprep.subr.mxu1 %v3956_v4  ;;  %3376 = vmatprep.subr.mxu0 %v3956_v4 }
 0x102   :  { %3420 = vmatpush3.msra.mxu1 %v4200_v31  ;;  %3377 = vmatpush3.msra.mxu0 %v4159_v61 }
 0x103   :  { %3421 = vmatprep.subr.mxu1 %v3956_v4  ;;  %3378 = vmatprep.subr.mxu0 %v3956_v4 }
 0x104   :  { %3422 = vmatpush3.msra.mxu1 %v4216_v41  ;;  %3423 = vmatprep.mubr.msk.f32.mxu1 %vm3957_vm0, %v3956_v4 }
 0x105   :  { %3379 = vmatpush3.msra.mxu0 %v4178_v7  ;;  %3424 = vmatmul.mubr.f32.vlgmr.msra.gmra.mxu1 %v767_v1  ;;  %v5213_v1 = vmov 3  }
 0x106   :  { %3461 = vmatprep.subr.mxu1 %v3956_v4  ;;  %3380 = vmatprep.subr.mxu0 %v3956_v4 }
 0x107   :  { %3462 = vmatpush3.msra.mxu1 %v3993_v5  ;;  %3381 = vmatpush3.msra.mxu0 %v4197_v27 }
 0x108   :  { %3463 = vmatprep.subr.mxu1 %v3956_v4  ;;  %3382 = vmatprep.subr.mxu0 %v3956_v4 }
 0x109   :  { %3464 = vmatpush3.msra.mxu1 %v3995_v6  ;;  %3383 = vmatpush3.msra.mxu0 %v4213_v38 }
 0x10a   :  { %3465 = vmatprep.subr.mxu1 %v3956_v4  ;;  %3384 = vmatprep.subr.mxu0 %v3956_v4 }
 0x10b   :  { %3466 = vmatpush3.msra.mxu1 %v4007_v10  ;;  %3385 = vmatpush3.msra.mxu0 %v4229_v49 }
 0x10c   :  { %3467 = vmatprep.subr.mxu1 %v3956_v4  ;;  %3386 = vmatprep.subr.mxu0 %v3956_v4 }
 0x10d   :  { %3468 = vmatpush3.msra.mxu1 %v4009_v11  ;;  %3387 = vmatpush3.msra.mxu0 %v4243_v63 }
 0x10e   :  { %3388 = vmatprep.mubr.msk.f32.mxu0 %vm3957_vm0, %v3956_v4  ;;  %3469 = vmatprep.subr.mxu1 %v3956_v4 }
 0x10f   :  { %3389 = vmatmul.mubr.f32.vlgmr.msra.gmra.mxu0 %v4514_v13  ;;  %3426 = vmatprep.subr.mxu0 %v3956_v4  ;;  %v3932_v13 = vld [vmem:[%s5188_s0] sm:$0xff]  ;;  %s3962_s0 = smov 32  }
 0x110   :  { %3470 = vmatpush3.msra.mxu1 %v4012_v12  ;;  %3427 = vmatpush3.msra.mxu0 %v4051_v24 }
 0x111   :  { %3471 = vmatprep.subr.mxu1 %v3956_v4  ;;  %3428 = vmatprep.subr.mxu0 %v3956_v4 }
 0x112   :  { %3472 = vmatpush3.msra.mxu1 %v4030_v18  ;;  %3429 = vmatpush3.msra.mxu0 %v4054_v25 }
 0x113   :  { %3473 = vmatprep.subr.mxu1 %v3956_v4  ;;  %3430 = vmatprep.subr.mxu0 %v3956_v4 }
 0x114   :  { %3474 = vmatpush3.msra.mxu1 %v4032_v19  ;;  %3431 = vmatpush3.msra.mxu0 %v4061_v28 }
 0x115   :  { %3475 = vmatprep.subr.mxu1 %v3956_v4  ;;  %3432 = vmatprep.subr.mxu0 %v3956_v4 }
 0x116   :  { %3476 = vmatpush3.msra.mxu1 %v4046_v23  ;;  %3433 = vmatpush3.msra.mxu0 %v4064_v29 }
 0x117   :  { %3477 = vmatprep.subr.mxu1 %v3956_v4  ;;  %3434 = vmatprep.subr.mxu0 %v3956_v4 }
 0x118   :  { %3478 = vmatpush3.msra.mxu1 %v4116_v47  ;;  %3435 = vmatpush3.msra.mxu0 %v4076_v33 }
 0x119   :  { %3479 = vmatprep.subr.mxu1 %v3956_v4  ;;  %3436 = vmatprep.subr.mxu0 %v3956_v4 }
 0x11a   :  { %3480 = vmatpush3.msra.mxu1 %v4119_v48  ;;  %3437 = vmatpush3.msra.mxu0 %v4082_v35 }
 0x11b   :  { %3481 = vmatprep.subr.mxu1 %v3956_v4  ;;  %3438 = vmatprep.subr.mxu0 %v3956_v4 }
 0x11c   :  { %3482 = vmatpush3.msra.mxu1 %v4128_v51  ;;  %3439 = vmatpush3.msra.mxu0 %v4105_v43 }
 0x11d   :  { %3483 = vmatprep.subr.mxu1 %v3956_v4  ;;  %3440 = vmatprep.subr.mxu0 %v3956_v4 }
 0x11e   :  { %3484 = vmatpush3.msra.mxu1 %v4143_v56  ;;  %3441 = vmatpush3.msra.mxu0 %v4125_v50 }
 0x11f   :  { %3485 = vmatprep.subr.mxu1 %v3956_v4  ;;  %3442 = vmatprep.subr.mxu0 %v3956_v4 }
 0x120   :  { %3486 = vmatpush3.msra.mxu1 %v4162_v62  ;;  %3443 = vmatpush3.msra.mxu0 %v4156_v60 }
 0x121   :  { %3487 = vmatprep.subr.mxu1 %v3956_v4  ;;  %3444 = vmatprep.subr.mxu0 %v3956_v4 }
 0x122   :  { %3488 = vmatpush3.msra.mxu1 %v4181_v8  ;;  %3445 = vmatpush3.msra.mxu0 %v4175_v3 }
 0x123   :  { %3489 = vmatprep.subr.mxu1 %v3956_v4  ;;  %3446 = vmatprep.subr.mxu0 %v3956_v4 }
 0x124   :  { %3490 = vmatpush3.msra.mxu1 %v4200_v31  ;;  %3447 = vmatpush3.msra.mxu0 %v4194_v15 }
 0x125   :  { %3491 = vmatprep.subr.mxu1 %v3956_v4  ;;  %3448 = vmatprep.subr.mxu0 %v3956_v4 }
 0x126   :  { %3492 = vmatpush3.msra.mxu1 %v4216_v41  ;;  %3493 = vmatprep.mubr.msk.f32.mxu1 %vm3957_vm0, %v3956_v4 }
 0x127   :  { %3449 = vmatpush3.msra.mxu0 %v4210_v37  ;;  %3494 = vmatmul.mubr.msk.f32.vlgmr.msra.gmra.mxu1 %vm681_vm2, %v5240_v44 }
 0x128   :  { %3531 = vmatprep.subr.mxu1 %v3956_v4  ;;  %3930 = vset.pattern.permute.xlu1 %v5213_v1 }
 0x129   :  { %3450 = vmatprep.subr.mxu0 %v3956_v4  ;;  %3532 = vmatpush3.msra.mxu1 %v4094_v39 }
 0x12a   :  { %1973 = vperm.xlu1 %3930, %v3932_v13   ;;  %3451 = vmatpush3.msra.mxu0 %v4226_v46  ;;  %v5243_v13 = vld [vmem:[#allocation12_spill] sm:$0xff] }
 0x12b   :  { %3533 = vmatprep.subr.mxu1 %v3956_v4  ;;  %3452 = vmatprep.subr.mxu0 %v3956_v4 }
 0x12c   :  { %3534 = vmatpush3.msra.mxu1 %v4096_v40  ;;  %3453 = vmatpush3.msra.mxu0 %v4240_v58 }
 0x12d   :  { %3535 = vmatprep.subr.mxu1 %v3956_v4  ;;  %3454 = vmatprep.subr.mxu0 %v3956_v4 }
 0x12e   :  { %3536 = vmatpush3.msra.mxu1 %v4112_v45  ;;  %3455 = vmatpush3.msra.mxu0 %v4254_v34 }
 0x12f   :  { %3537 = vmatprep.subr.mxu1 %v3956_v4  ;;  %3456 = vmatprep.subr.mxu0 %v3956_v4 }
 0x130   :  { %3538 = vmatpush3.msra.mxu1 %v4134_v53  ;;  %3457 = vmatpush3.msra.mxu0 %v4265_v42 }
 0x131   :  { %3458 = vmatprep.mubr.msk.f32.mxu0 %vm3957_vm0, %v3956_v4  ;;  %3539 = vmatprep.subr.mxu1 %v3956_v4 }
 0x132   :  { %3459 = vmatmul.mubr.msk.f32.vlgmr.msra.gmra.mxu0 %vm681_vm2, %v5240_v44  ;;  %3496 = vmatprep.subr.mxu0 %v3956_v4 }
 0x133   :  { %3540 = vmatpush3.msra.mxu1 %v4153_v59  ;;  %3497 = vmatpush3.msra.mxu0 %v3993_v5 }
 0x134   :  { %3541 = vmatprep.subr.mxu1 %v3956_v4  ;;  %3498 = vmatprep.subr.mxu0 %v3956_v4 }
 0x135   :  { %3542 = vmatpush3.msra.mxu1 %v4172_v2  ;;  %3499 = vmatpush3.msra.mxu0 %v3995_v6  ;;  %v5248_v2 = vld [vmem:[#allocation17_spill] sm:$0xff] }
 0x136   :  { %3543 = vmatprep.subr.mxu1 %v3956_v4  ;;  %3500 = vmatprep.subr.mxu0 %v3956_v4 }
 0x137   :  { %3544 = vmatpush3.msra.mxu1 %v5232_v52  ;;  %3501 = vmatpush3.msra.mxu0 %v4007_v10  ;;  %v5246_v52 = vld [vmem:[#allocation15_spill] sm:$0xff] }
 0x138   :  { %3545 = vmatprep.subr.mxu1 %v3956_v4  ;;  %3502 = vmatprep.subr.mxu0 %v3956_v4 }
 0x139   :  { %3546 = vmatpush3.msra.mxu1 %v5233_v0  ;;  %3503 = vmatpush3.msra.mxu0 %v4009_v11 }
 0x13a   :  { %3547 = vmatprep.subr.mxu1 %v3956_v4  ;;  %3504 = vmatprep.subr.mxu0 %v3956_v4 }
 0x13b   :  { %3548 = vmatpush3.msra.mxu1 %v5241_v14  ;;  %3505 = vmatpush3.msra.mxu0 %v4012_v12  ;;  %v5244_v14 = vld [vmem:[#allocation13_spill] sm:$0xff] }
 0x13c   :  { %3549 = vmatprep.subr.mxu1 %v3956_v4  ;;  %3506 = vmatprep.subr.mxu0 %v3956_v4 }
 0x13d   :  { %3550 = vmatpush3.msra.mxu1 %v5242_v9  ;;  %3507 = vmatpush3.msra.mxu0 %v4030_v18  ;;  %v2660_v9 = vsel %vm1328_vm3, 1.0, %v3956_v4 }
 0x13e   :  { %3551 = vmatprep.subr.mxu1 %v3956_v4  ;;  %3508 = vmatprep.subr.mxu0 %v3956_v4 }
 0x13f   :  { %3552 = vmatpush3.msra.mxu1 %v5243_v13  ;;  %3509 = vmatpush3.msra.mxu0 %v4032_v19  ;;  %v275_v1 = vpop.f32.mrf.mxu1  ;;  %v5245_v13 = vld [vmem:[#allocation14_spill] sm:$0xff] }
 0x140   :  { %3553 = vmatprep.subr.mxu1 %v3956_v4  ;;  %3510 = vmatprep.subr.mxu0 %v3956_v4 }
 0x141   :  { %3554 = vmatpush3.msra.mxu1 %v5244_v14  ;;  %3511 = vmatpush3.msra.mxu0 %v4046_v23  ;;  %v3145_v0 = vpop.f32.mrf.mxu1  ;;  %v4751_v14 = vsub.f32 %v2660_v9, %v2660_v9 }
 0x142   :  { %3555 = vmatprep.subr.mxu1 %v3956_v4  ;;  %3512 = vmatprep.subr.mxu0 %v3956_v4  ;;  %v5247_v0 = vld [vmem:[#allocation16_spill] sm:$0xff] }
 0x143   :  { %3556 = vmatpush3.msra.mxu1 %v5245_v13  ;;  %3513 = vmatpush3.msra.mxu0 %v4116_v47 }
 0x144   :  { %3557 = vmatprep.subr.mxu1 %v3956_v4  ;;  %3514 = vmatprep.subr.mxu0 %v3956_v4 }
 0x145   :  { %3558 = vmatpush3.msra.mxu1 %v5246_v52  ;;  %3515 = vmatpush3.msra.mxu0 %v4119_v48 }
 0x146   :  { %3559 = vmatprep.subr.mxu1 %v3956_v4  ;;  %3516 = vmatprep.subr.mxu0 %v3956_v4 }
 0x147   :  { %3560 = vmatpush3.msra.mxu1 %v5247_v0  ;;  %3517 = vmatpush3.msra.mxu0 %v4128_v51 }
 0x148   :  { %3561 = vmatprep.subr.mxu1 %v3956_v4  ;;  %3518 = vmatprep.subr.mxu0 %v3956_v4  ;;  %v124_v9 = vpop.f32.mrf.mxu0 }
 0x149   :  { %3562 = vmatpush3.msra.mxu1 %v5248_v2  ;;  %3563 = vmatprep.mubr.msk.f32.mxu1 %vm3957_vm0, %v3956_v4  ;;  %v4765_v52 = vadd.f32 %v275_v1, %v124_v9  ;;  %v5249_v2 = vand.u32 4294901760, %v4751_v14 }
 0x14a   :  { %3519 = vmatpush3.msra.mxu0 %v4143_v56  ;;  %3564 = vmatmul.mubr.msk.f32.vlgmr.msra.gmra.mxu1 %vm1328_vm3, %v5240_v44  ;;  %v3110_v13 = vpop.f32.mrf.mxu0 }
 0x14b   :  { %3601 = vmatprep.subr.mxu1 %v3956_v4  ;;  %3520 = vmatprep.subr.mxu0 %v3956_v4  ;;  %v1415_v1 = vsub.f32 %v4751_v14, %v5249_v2 }
 0x14c   :  { %3602 = vmatpush3.msra.mxu1 %v3993_v5  ;;  %3521 = vmatpush3.msra.mxu0 %v4162_v62 }
 0x14d   :  { %3603 = vmatprep.subr.mxu1 %v3956_v4  ;;  %3522 = vmatprep.subr.mxu0 %v3956_v4  ;;  %v1416_v13 = vand.u32 4294901760, %v1415_v1 }
 0x14e   :  { %3604 = vmatpush3.msra.mxu1 %v3995_v6  ;;  %3523 = vmatpush3.msra.mxu0 %v4181_v8 }
 0x14f   :  { %3605 = vmatprep.subr.mxu1 %v3956_v4  ;;  %3524 = vmatprep.subr.mxu0 %v3956_v4 }
 0x150   :  { %3606 = vmatpush3.msra.mxu1 %v4007_v10  ;;  %3525 = vmatpush3.msra.mxu0 %v4200_v31 }
 0x151   :  { %3607 = vmatprep.subr.mxu1 %v3956_v4  ;;  %3526 = vmatprep.subr.mxu0 %v3956_v4 }
 0x152   :  { %3608 = vmatpush3.msra.mxu1 %v4009_v11  ;;  %3527 = vmatpush3.msra.mxu0 %v4216_v41 }
 0x153   :  { %3528 = vmatprep.mubr.msk.f32.mxu0 %vm3957_vm0, %v3956_v4  ;;  %3609 = vmatprep.subr.mxu1 %v3956_v4 }
 0x154   :  { %3529 = vmatmul.mubr.f32.vlgmr.msra.gmra.mxu0 %v1416_v13  ;;  %3566 = vmatprep.subr.mxu0 %v3956_v4 }
 0x155   :  { %3610 = vmatpush3.msra.mxu1 %v4012_v12  ;;  %3567 = vmatpush3.msra.mxu0 %v4024_v16 }
 0x156   :  { %3611 = vmatprep.subr.mxu1 %v3956_v4  ;;  %3568 = vmatprep.subr.mxu0 %v3956_v4 }
 0x157   :  { %3612 = vmatpush3.msra.mxu1 %v4030_v18  ;;  %3569 = vmatpush3.msra.mxu0 %v4027_v17 }
 0x158   :  { %3613 = vmatprep.subr.mxu1 %v3956_v4  ;;  %3570 = vmatprep.subr.mxu0 %v3956_v4 }
 0x159   :  { %3614 = vmatpush3.msra.mxu1 %v4032_v19  ;;  %3571 = vmatpush3.msra.mxu0 %v4037_v20 }
 0x15a   :  { %3615 = vmatprep.subr.mxu1 %v3956_v4  ;;  %3572 = vmatprep.subr.mxu0 %v3956_v4 }
 0x15b   :  { %3616 = vmatpush3.msra.mxu1 %v4046_v23  ;;  %3573 = vmatpush3.msra.mxu0 %v4040_v21 }
 0x15c   :  { %3617 = vmatprep.subr.mxu1 %v3956_v4  ;;  %3574 = vmatprep.subr.mxu0 %v3956_v4 }
 0x15d   :  { %3618 = vmatpush3.msra.mxu1 %v4116_v47  ;;  %3575 = vmatpush3.msra.mxu0 %v4043_v22 }
 0x15e   :  { %3619 = vmatprep.subr.mxu1 %v3956_v4  ;;  %3576 = vmatprep.subr.mxu0 %v3956_v4 }
 0x15f   :  { %3620 = vmatpush3.msra.mxu1 %v4119_v48  ;;  %3577 = vmatpush3.msra.mxu0 %v4057_v26  ;;  %v468_v2 = vpop.f32.mrf.mxu1 }
 0x160   :  { %3621 = vmatprep.subr.mxu1 %v3956_v4  ;;  %3578 = vmatprep.subr.mxu0 %v3956_v4 }
 0x161   :  { %3622 = vmatpush3.msra.mxu1 %v4128_v51  ;;  %3579 = vmatpush3.msra.mxu0 %v4068_v30  ;;  %v3215_v9 = vpop.f32.mrf.mxu1 }
 0x162   :  { %3623 = vmatprep.subr.mxu1 %v3956_v4  ;;  %3580 = vmatprep.subr.mxu0 %v3956_v4 }
 0x163   :  { %3624 = vmatpush3.msra.mxu1 %v4143_v56  ;;  %3581 = vmatpush3.msra.mxu0 %v4086_v36 }
 0x164   :  { %3625 = vmatprep.subr.mxu1 %v3956_v4  ;;  %3582 = vmatprep.subr.mxu0 %v3956_v4 }
 0x165   :  { %3626 = vmatpush3.msra.mxu1 %v4162_v62  ;;  %3583 = vmatpush3.msra.mxu0 %v4137_v54 }
 0x166   :  { %3627 = vmatprep.subr.mxu1 %v3956_v4  ;;  %3584 = vmatprep.subr.mxu0 %v3956_v4 }
 0x167   :  { %3628 = vmatpush3.msra.mxu1 %v4181_v8  ;;  %3585 = vmatpush3.msra.mxu0 %v4140_v55  ;;  %v5250_v55 = vand.u32 4294901760, %v4751_v14 }
 0x168   :  { %3629 = vmatprep.subr.mxu1 %v3956_v4  ;;  %3586 = vmatprep.subr.mxu0 %v3956_v4 }
 0x169   :  { %3630 = vmatpush3.msra.mxu1 %v4200_v31  ;;  %3587 = vmatpush3.msra.mxu0 %v4159_v61  ;;  %v379_v1 = vpop.f32.mrf.mxu0 }
 0x16a   :  { %3631 = vmatprep.subr.mxu1 %v3956_v4  ;;  %3588 = vmatprep.subr.mxu0 %v3956_v4  ;;  %v380_v13 = vadd.f32 %v379_v1, %v4765_v52 }
 0x16b   :  { %3632 = vmatpush3.msra.mxu1 %v4216_v41  ;;  %3633 = vmatprep.mubr.msk.f32.mxu1 %vm3957_vm0, %v3956_v4  ;;  %v3180_v9 = vpop.f32.mrf.mxu0 }
 0x16c   :  { %3589 = vmatpush3.msra.mxu0 %v4178_v7  ;;  %3634 = vmatmul.mubr.f32.vlgmr.msra.gmra.mxu1 %v5250_v55  ;;  %v4846_v54 = vadd.f32 %v468_v2, %v380_v13 }
 0x16d   :  { %3671 = vmatprep.subr.mxu1 %v3956_v4  ;;  %3590 = vmatprep.subr.mxu0 %v3956_v4 }
 0x16e   :  { %3672 = vmatpush3.msra.mxu1 %v3993_v5  ;;  %3591 = vmatpush3.msra.mxu0 %v4197_v27 }
 0x16f   :  { %3673 = vmatprep.subr.mxu1 %v3956_v4  ;;  %3592 = vmatprep.subr.mxu0 %v3956_v4 }
 0x170   :  { %3674 = vmatpush3.msra.mxu1 %v3995_v6  ;;  %3593 = vmatpush3.msra.mxu0 %v4213_v38 }
 0x171   :  { %3675 = vmatprep.subr.mxu1 %v3956_v4  ;;  %3594 = vmatprep.subr.mxu0 %v3956_v4 }
 0x172   :  { %3676 = vmatpush3.msra.mxu1 %v4007_v10  ;;  %3595 = vmatpush3.msra.mxu0 %v4229_v49 }
 0x173   :  { %3677 = vmatprep.subr.mxu1 %v3956_v4  ;;  %3596 = vmatprep.subr.mxu0 %v3956_v4 }
 0x174   :  { %3678 = vmatpush3.msra.mxu1 %v4009_v11  ;;  %3597 = vmatpush3.msra.mxu0 %v4243_v63 }
 0x175   :  { %3598 = vmatprep.mubr.msk.f32.mxu0 %vm3957_vm0, %v3956_v4  ;;  %3679 = vmatprep.subr.mxu1 %v3956_v4 }
 0x176   :  { %3599 = vmatmul.mubr.f32.vlgmr.msra.gmra.mxu0 %v4751_v14  ;;  %3636 = vmatprep.subr.mxu0 %v3956_v4 }
 0x177   :  { %3680 = vmatpush3.msra.mxu1 %v4012_v12  ;;  %3637 = vmatpush3.msra.mxu0 %v4051_v24 }
 0x178   :  { %3681 = vmatprep.subr.mxu1 %v3956_v4  ;;  %3638 = vmatprep.subr.mxu0 %v3956_v4 }
 0x179   :  { %3682 = vmatpush3.msra.mxu1 %v4030_v18  ;;  %3639 = vmatpush3.msra.mxu0 %v4054_v25 }
 0x17a   :  { %3683 = vmatprep.subr.mxu1 %v3956_v4  ;;  %3640 = vmatprep.subr.mxu0 %v3956_v4 }
 0x17b   :  { %3684 = vmatpush3.msra.mxu1 %v4032_v19  ;;  %3641 = vmatpush3.msra.mxu0 %v4061_v28 }
 0x17c   :  { %3685 = vmatprep.subr.mxu1 %v3956_v4  ;;  %3642 = vmatprep.subr.mxu0 %v3956_v4 }
 0x17d   :  { %3686 = vmatpush3.msra.mxu1 %v4046_v23  ;;  %3643 = vmatpush3.msra.mxu0 %v4064_v29 }
 0x17e   :  { %3687 = vmatprep.subr.mxu1 %v3956_v4  ;;  %3644 = vmatprep.subr.mxu0 %v3956_v4 }
 0x17f   :  { %3688 = vmatpush3.msra.mxu1 %v4116_v47  ;;  %3645 = vmatpush3.msra.mxu0 %v4076_v33 }
 0x180   :  { %3689 = vmatprep.subr.mxu1 %v3956_v4  ;;  %3646 = vmatprep.subr.mxu0 %v3956_v4 }
 0x181   :  { %3690 = vmatpush3.msra.mxu1 %v4119_v48  ;;  %3647 = vmatpush3.msra.mxu0 %v4082_v35  ;;  %v674_v55 = vpop.f32.mrf.mxu1 }
 0x182   :  { %3691 = vmatprep.subr.mxu1 %v3956_v4  ;;  %3648 = vmatprep.subr.mxu0 %v3956_v4 }
 0x183   :  { %3692 = vmatpush3.msra.mxu1 %v4128_v51  ;;  %3649 = vmatpush3.msra.mxu0 %v4105_v43  ;;  %v3285_v52 = vpop.f32.mrf.mxu1 }
 0x184   :  { %3693 = vmatprep.subr.mxu1 %v3956_v4  ;;  %3650 = vmatprep.subr.mxu0 %v3956_v4  ;;  %v5257_v52 = vld [vmem:[#allocation13_spill] sm:$0xff] }
 0x185   :  { %3694 = vmatpush3.msra.mxu1 %v4143_v56  ;;  %3651 = vmatpush3.msra.mxu0 %v4125_v50 }
 0x186   :  { %3695 = vmatprep.subr.mxu1 %v3956_v4  ;;  %3652 = vmatprep.subr.mxu0 %v3956_v4 }
 0x187   :  { %3696 = vmatpush3.msra.mxu1 %v4162_v62  ;;  %3653 = vmatpush3.msra.mxu0 %v4156_v60 }
 0x188   :  { %3697 = vmatprep.subr.mxu1 %v3956_v4  ;;  %3654 = vmatprep.subr.mxu0 %v3956_v4 }
 0x189   :  { %3698 = vmatpush3.msra.mxu1 %v4181_v8  ;;  %3655 = vmatpush3.msra.mxu0 %v4175_v3 }
 0x18a   :  { %3699 = vmatprep.subr.mxu1 %v3956_v4  ;;  %3656 = vmatprep.subr.mxu0 %v3956_v4 }
 0x18b   :  { %3700 = vmatpush3.msra.mxu1 %v4200_v31  ;;  %3657 = vmatpush3.msra.mxu0 %v4194_v15  ;;  %v587_v14 = vpop.f32.mrf.mxu0 }
 0x18c   :  { %3701 = vmatprep.subr.mxu1 %v3956_v4  ;;  %3658 = vmatprep.subr.mxu0 %v3956_v4  ;;  %v588_v2 = vadd.f32 %v587_v14, %v4846_v54  ;;  %v5255_v54 = vld [vmem:[#allocation11_spill] sm:$0xff] }
 0x18d   :  { %3702 = vmatpush3.msra.mxu1 %v4216_v41  ;;  %3703 = vmatprep.mubr.msk.f32.mxu1 %vm3957_vm0, %v3956_v4  ;;  %v3250_v1 = vpop.f32.mrf.mxu0 }
 0x18e   :  { %3659 = vmatpush3.msra.mxu0 %v4210_v37  ;;  %3704 = vmatmul.mubr.msk.f32.vlgmr.msra.gmra.mxu1 %vm1328_vm3, %v5240_v44  ;;  %v4922_v13 = vadd.f32 %v674_v55, %v588_v2  ;;  %v5258_v2 = vld [vmem:[#allocation14_spill] sm:$0xff] }
 0x18f   :  { %3741 = vmatprep.subr.mxu1 %v3956_v4  ;;  %3660 = vmatprep.subr.mxu0 %v3956_v4 }
 0x190   :  { %3742 = vmatpush3.msra.mxu1 %v4094_v39  ;;  %3661 = vmatpush3.msra.mxu0 %v4226_v46  ;;  %v5251_v39 = vld [vmem:[#allocation7_spill] sm:$0xff] }
 0x191   :  { %3743 = vmatprep.subr.mxu1 %v3956_v4  ;;  %3662 = vmatprep.subr.mxu0 %v3956_v4 }
 0x192   :  { %3744 = vmatpush3.msra.mxu1 %v4096_v40  ;;  %3663 = vmatpush3.msra.mxu0 %v4240_v58  ;;  %v5252_v40 = vld [vmem:[#allocation8_spill] sm:$0xff] }
 0x193   :  { %3745 = vmatprep.subr.mxu1 %v3956_v4  ;;  %3664 = vmatprep.subr.mxu0 %v3956_v4 }
 0x194   :  { %3746 = vmatpush3.msra.mxu1 %v4112_v45  ;;  %3665 = vmatpush3.msra.mxu0 %v4254_v34  ;;  %v5253_v45 = vld [vmem:[#allocation9_spill] sm:$0xff] }
 0x195   :  { %3747 = vmatprep.subr.mxu1 %v3956_v4  ;;  %3666 = vmatprep.subr.mxu0 %v3956_v4 }
 0x196   :  { %3748 = vmatpush3.msra.mxu1 %v4134_v53  ;;  %3667 = vmatpush3.msra.mxu0 %v4265_v42  ;;  %v5254_v53 = vld [vmem:[#allocation10_spill] sm:$0xff] }
 0x197   :  { %3668 = vmatprep.mubr.msk.f32.mxu0 %vm3957_vm0, %v3956_v4  ;;  %3749 = vmatprep.subr.mxu1 %v3956_v4 }
 0x198   :  { %3669 = vmatmul.mubr.msk.f32.vlgmr.msra.gmra.mxu0 %vm1328_vm3, %v5240_v44  ;;  %3706 = vmatprep.subr.mxu0 %v3956_v4 }
 0x199   :  { %3750 = vmatpush3.msra.mxu1 %v4153_v59  ;;  %3707 = vmatpush3.msra.mxu0 %v3993_v5 }
 0x19a   :  { %3751 = vmatprep.subr.mxu1 %v3956_v4  ;;  %3708 = vmatprep.subr.mxu0 %v3956_v4 }
 0x19b   :  { %3752 = vmatpush3.msra.mxu1 %v5251_v39  ;;  %3709 = vmatpush3.msra.mxu0 %v3995_v6  ;;  %v5259_v39 = vld [vmem:[#allocation15_spill] sm:$0xff] }
 0x19c   :  { %3753 = vmatprep.subr.mxu1 %v3956_v4  ;;  %3710 = vmatprep.subr.mxu0 %v3956_v4 }
 0x19d   :  { %3754 = vmatpush3.msra.mxu1 %v5252_v40  ;;  %3711 = vmatpush3.msra.mxu0 %v4007_v10 }
 0x19e   :  { %3755 = vmatprep.subr.mxu1 %v3956_v4  ;;  %3712 = vmatprep.subr.mxu0 %v3956_v4 }
 0x19f   :  { %3756 = vmatpush3.msra.mxu1 %v5253_v45  ;;  %3713 = vmatpush3.msra.mxu0 %v4009_v11 }
 0x1a0   :  { %3757 = vmatprep.subr.mxu1 %v3956_v4  ;;  %3714 = vmatprep.subr.mxu0 %v3956_v4 }
 0x1a1   :  { %3758 = vmatpush3.msra.mxu1 %v5254_v53  ;;  %3715 = vmatpush3.msra.mxu0 %v4012_v12  ;;  %v5260_v53 = vld [vmem:[#allocation17_spill] sm:$0xff] }
 0x1a2   :  { %3759 = vmatprep.subr.mxu1 %v3956_v4  ;;  %3716 = vmatprep.subr.mxu0 %v3956_v4 }
 0x1a3   :  { %3760 = vmatpush3.msra.mxu1 %v5255_v54  ;;  %3717 = vmatpush3.msra.mxu0 %v4030_v18  ;;  %v4970_v59 = vpop.f32.mrf.mxu1 }
 0x1a4   :  { %3761 = vmatprep.subr.mxu1 %v3956_v4  ;;  %3718 = vmatprep.subr.mxu0 %v3956_v4 }
 0x1a5   :  { %3762 = vmatpush3.msra.mxu1 %v5256_v57  ;;  %3719 = vmatpush3.msra.mxu0 %v4032_v19  ;;  %v4976_v9 = vpop.permute.xlu1 %1973  ;;  %v3355_v55 = vpop.f32.mrf.mxu1 }
 0x1a6   :  { %3763 = vmatprep.subr.mxu1 %v3956_v4  ;;  %3720 = vmatprep.subr.mxu0 %v3956_v4  ;;  %vm1975_vm4 = vcmp.eq.s32.totalorder %v4299_v32, %v4976_v9 }
 0x1a7   :  { %3764 = vmatpush3.msra.mxu1 %v5257_v52  ;;  %3721 = vmatpush3.msra.mxu0 %v4046_v23  ;;  %v2664_v14 = vsel %vm1975_vm4, 1.0, %v3956_v4 }
 0x1a8   :  { %3765 = vmatprep.subr.mxu1 %v3956_v4  ;;  %3722 = vmatprep.subr.mxu0 %v3956_v4  ;;  %v4994_v1 = vsub.f32 %v2664_v14, %v2664_v14 }
 0x1a9   :  { %3766 = vmatpush3.msra.mxu1 %v5258_v2  ;;  %3723 = vmatpush3.msra.mxu0 %v4116_v47 }
 0x1aa   :  { %3767 = vmatprep.subr.mxu1 %v3956_v4  ;;  %3724 = vmatprep.subr.mxu0 %v3956_v4  ;;  %v2061_v45 = vand.u32 4294901760, %v4994_v1 }
 0x1ab   :  { %3768 = vmatpush3.msra.mxu1 %v5259_v39  ;;  %3725 = vmatpush3.msra.mxu0 %v4119_v48 }
 0x1ac   :  { %3769 = vmatprep.subr.mxu1 %v3956_v4  ;;  %3726 = vmatprep.subr.mxu0 %v3956_v4 }
 0x1ad   :  { %3770 = vmatpush3.msra.mxu1 %v5247_v0  ;;  %3727 = vmatpush3.msra.mxu0 %v4128_v51  ;;  %v5002_v40 = vpop.f32.mrf.mxu0  ;;  %v2062_v0 = vsub.f32 %v4994_v1, %v2061_v45 }
 0x1ae   :  { %3771 = vmatprep.subr.mxu1 %v3956_v4  ;;  %3728 = vmatprep.subr.mxu0 %v3956_v4 }
 0x1af   :  { %3772 = vmatpush3.msra.mxu1 %v5260_v53  ;;  %3773 = vmatprep.mubr.msk.f32.mxu1 %vm3957_vm0, %v3956_v4  ;;  %v3320_v54 = vpop.f32.mrf.mxu0  ;;  %v2063_v57 = vand.u32 4294901760, %v2062_v0 }
 0x1b0   :  { %3729 = vmatpush3.msra.mxu0 %v4143_v56  ;;  %3774 = vmatmul.mubr.msk.f32.vlgmr.msra.gmra.mxu1 %vm1975_vm4, %v5240_v44 }
 0x1b1   :  { %3811 = vmatprep.subr.mxu1 %v3956_v4  ;;  %3730 = vmatprep.subr.mxu0 %v3956_v4 }
 0x1b2   :  { %3812 = vmatpush3.msra.mxu1 %v3993_v5  ;;  %3731 = vmatpush3.msra.mxu0 %v4162_v62 }
 0x1b3   :  { %3813 = vmatprep.subr.mxu1 %v3956_v4  ;;  %3732 = vmatprep.subr.mxu0 %v3956_v4 }
 0x1b4   :  { %3814 = vmatpush3.msra.mxu1 %v3995_v6  ;;  %3733 = vmatpush3.msra.mxu0 %v4181_v8 }
 0x1b5   :  { %3815 = vmatprep.subr.mxu1 %v3956_v4  ;;  %3734 = vmatprep.subr.mxu0 %v3956_v4 }
 0x1b6   :  { %3816 = vmatpush3.msra.mxu1 %v4007_v10  ;;  %3735 = vmatpush3.msra.mxu0 %v4200_v31 }
 0x1b7   :  { %3817 = vmatprep.subr.mxu1 %v3956_v4  ;;  %3736 = vmatprep.subr.mxu0 %v3956_v4 }
 0x1b8   :  { %3818 = vmatpush3.msra.mxu1 %v4009_v11  ;;  %3737 = vmatpush3.msra.mxu0 %v4216_v41 }
 0x1b9   :  { %3738 = vmatprep.mubr.msk.f32.mxu0 %vm3957_vm0, %v3956_v4  ;;  %3819 = vmatprep.subr.mxu1 %v3956_v4 }
 0x1ba   :  { %3739 = vmatmul.mubr.f32.vlgmr.msra.gmra.mxu0 %v2063_v57  ;;  %3776 = vmatprep.subr.mxu0 %v3956_v4 }
 0x1bb   :  { %3820 = vmatpush3.msra.mxu1 %v4012_v12  ;;  %3777 = vmatpush3.msra.mxu0 %v4024_v16 }
 0x1bc   :  { %3821 = vmatprep.subr.mxu1 %v3956_v4  ;;  %3778 = vmatprep.subr.mxu0 %v3956_v4 }
 0x1bd   :  { %3822 = vmatpush3.msra.mxu1 %v4030_v18  ;;  %3779 = vmatpush3.msra.mxu0 %v4027_v17 }
 0x1be   :  { %3823 = vmatprep.subr.mxu1 %v3956_v4  ;;  %3780 = vmatprep.subr.mxu0 %v3956_v4 }
 0x1bf   :  { %3824 = vmatpush3.msra.mxu1 %v4032_v19  ;;  %3781 = vmatpush3.msra.mxu0 %v4037_v20  ;;  %v5261_v20 = vld [vmem:[#allocation5_spill] sm:$0xff] }
 0x1c0   :  { %3825 = vmatprep.subr.mxu1 %v3956_v4  ;;  %3782 = vmatprep.subr.mxu0 %v3956_v4 }
 0x1c1   :  { %3826 = vmatpush3.msra.mxu1 %v4046_v23  ;;  %3783 = vmatpush3.msra.mxu0 %v4040_v21  ;;  %v5262_v21 = vld [vmem:[#allocation6_spill] sm:$0xff] }
 0x1c2   :  { %3827 = vmatprep.subr.mxu1 %v3956_v4  ;;  %3784 = vmatprep.subr.mxu0 %v3956_v4 }
 0x1c3   :  { %3828 = vmatpush3.msra.mxu1 %v4116_v47  ;;  %3785 = vmatpush3.msra.mxu0 %v4043_v22 }
 0x1c4   :  { %3829 = vmatprep.subr.mxu1 %v3956_v4  ;;  %3786 = vmatprep.subr.mxu0 %v3956_v4 }
 0x1c5   :  { %3830 = vmatpush3.msra.mxu1 %v4119_v48  ;;  %3787 = vmatpush3.msra.mxu0 %v4057_v26  ;;  %v5060_v16 = vpop.f32.mrf.mxu1 }
 0x1c6   :  { %3831 = vmatprep.subr.mxu1 %v3956_v4  ;;  %3788 = vmatprep.subr.mxu0 %v3956_v4 }
 0x1c7   :  { %3832 = vmatpush3.msra.mxu1 %v4128_v51  ;;  %3789 = vmatpush3.msra.mxu0 %v4068_v30  ;;  %v3425_v17 = vpop.f32.mrf.mxu1 }
 0x1c8   :  { %3833 = vmatprep.subr.mxu1 %v3956_v4  ;;  %3790 = vmatprep.subr.mxu0 %v3956_v4 }
 0x1c9   :  { %3834 = vmatpush3.msra.mxu1 %v4143_v56  ;;  %3791 = vmatpush3.msra.mxu0 %v4086_v36 }
 0x1ca   :  { %3835 = vmatprep.subr.mxu1 %v3956_v4  ;;  %3792 = vmatprep.subr.mxu0 %v3956_v4 }
 0x1cb   :  { %3836 = vmatpush3.msra.mxu1 %v4162_v62  ;;  %3793 = vmatpush3.msra.mxu0 %v5261_v20 }
 0x1cc   :  { %3837 = vmatprep.subr.mxu1 %v3956_v4  ;;  %3794 = vmatprep.subr.mxu0 %v3956_v4 }
 0x1cd   :  { %3838 = vmatpush3.msra.mxu1 %v4181_v8  ;;  %3795 = vmatpush3.msra.mxu0 %v5262_v21 }
 0x1ce   :  { %3839 = vmatprep.subr.mxu1 %v3956_v4  ;;  %3796 = vmatprep.subr.mxu0 %v3956_v4 }
 0x1cf   :  { %3840 = vmatpush3.msra.mxu1 %v4200_v31  ;;  %3797 = vmatpush3.msra.mxu0 %v4159_v61  ;;  %v5082_v22 = vpop.f32.mrf.mxu0 }
 0x1d0   :  { %3841 = vmatprep.subr.mxu1 %v3956_v4  ;;  %3798 = vmatprep.subr.mxu0 %v3956_v4 }
 0x1d1   :  { %3842 = vmatpush3.msra.mxu1 %v4216_v41  ;;  %3843 = vmatprep.mubr.msk.f32.mxu1 %vm3957_vm0, %v3956_v4  ;;  %v3390_v26 = vpop.f32.mrf.mxu0 }
 0x1d2   :  { %3799 = vmatpush3.msra.mxu0 %v4178_v7  ;;  %3844 = vmatmul.mubr.f32.vlgmr.msra.gmra.mxu1 %v2061_v45 }
 0x1d3   :  { %3881 = vmatprep.subr.mxu1 %v3956_v4  ;;  %3800 = vmatprep.subr.mxu0 %v3956_v4 }
 0x1d4   :  { %3882 = vmatpush3.msra.mxu1 %v3993_v5  ;;  %3801 = vmatpush3.msra.mxu0 %v4197_v27 }
 0x1d5   :  { %3883 = vmatprep.subr.mxu1 %v3956_v4  ;;  %3802 = vmatprep.subr.mxu0 %v3956_v4 }
 0x1d6   :  { %3884 = vmatpush3.msra.mxu1 %v3995_v6  ;;  %3803 = vmatpush3.msra.mxu0 %v4213_v38 }
 0x1d7   :  { %3885 = vmatprep.subr.mxu1 %v3956_v4  ;;  %3804 = vmatprep.subr.mxu0 %v3956_v4 }
 0x1d8   :  { %3886 = vmatpush3.msra.mxu1 %v4007_v10  ;;  %3805 = vmatpush3.msra.mxu0 %v4229_v49  ;;  %v923_v10 = vadd.f32 %v4970_v59, %v5002_v40 }
 0x1d9   :  { %3887 = vmatprep.subr.mxu1 %v3956_v4  ;;  %3806 = vmatprep.subr.mxu0 %v3956_v4 }
 0x1da   :  { %3888 = vmatpush3.msra.mxu1 %v4009_v11  ;;  %3807 = vmatpush3.msra.mxu0 %v4243_v63  ;;  %v1027_v11 = vadd.f32 %v5082_v22, %v923_v10 }
 0x1db   :  { %3808 = vmatprep.mubr.msk.f32.mxu0 %vm3957_vm0, %v3956_v4  ;;  %3889 = vmatprep.subr.mxu1 %v3956_v4 }
 0x1dc   :  { %3809 = vmatmul.mubr.f32.vlgmr.msra.gmra.mxu0 %v4994_v1  ;;  %3846 = vmatprep.subr.mxu0 %v3956_v4 }
 0x1dd   :  { %3890 = vmatpush3.msra.mxu1 %v4012_v12  ;;  %3847 = vmatpush3.msra.mxu0 %v4051_v24  ;;  %v1116_v12 = vadd.f32 %v5060_v16, %v1027_v11 }
 0x1de   :  { %3891 = vmatprep.subr.mxu1 %v3956_v4  ;;  %3848 = vmatprep.subr.mxu0 %v3956_v4 }
 0x1df   :  { %3892 = vmatpush3.msra.mxu1 %v4030_v18  ;;  %3849 = vmatpush3.msra.mxu0 %v4054_v25  ;;  %v5263_v25 = vmov 3  }
 0x1e0   :  { %3893 = vmatprep.subr.mxu1 %v3956_v4  ;;  %3850 = vmatprep.subr.mxu0 %v3956_v4 }
 0x1e1   :  { %3894 = vmatpush3.msra.mxu1 %v4032_v19  ;;  %3851 = vmatpush3.msra.mxu0 %v4061_v28 }
 0x1e2   :  { %3895 = vmatprep.subr.mxu1 %v3956_v4  ;;  %3852 = vmatprep.subr.mxu0 %v3956_v4 }
 0x1e3   :  { %3896 = vmatpush3.msra.mxu1 %v4046_v23  ;;  %3853 = vmatpush3.msra.mxu0 %v4064_v29 }
 0x1e4   :  { %3897 = vmatprep.subr.mxu1 %v3956_v4  ;;  %3854 = vmatprep.subr.mxu0 %v3956_v4 }
 0x1e5   :  { %3898 = vmatpush3.msra.mxu1 %v4116_v47  ;;  %3855 = vmatpush3.msra.mxu0 %v4076_v33 }
 0x1e6   :  { %3899 = vmatprep.subr.mxu1 %v3956_v4  ;;  %3856 = vmatprep.subr.mxu0 %v3956_v4 }
 0x1e7   :  { %3900 = vmatpush3.msra.mxu1 %v4119_v48  ;;  %3857 = vmatpush3.msra.mxu0 %v4082_v35  ;;  %v1321_v5 = vpop.f32.mrf.mxu1 }
 0x1e8   :  { %3901 = vmatprep.subr.mxu1 %v3956_v4  ;;  %3858 = vmatprep.subr.mxu0 %v3956_v4 }
 0x1e9   :  { %3902 = vmatpush3.msra.mxu1 %v4128_v51  ;;  %3859 = vmatpush3.msra.mxu0 %v4105_v43  ;;  %v3495_v6 = vpop.f32.mrf.mxu1 }
 0x1ea   :  { %3903 = vmatprep.subr.mxu1 %v3956_v4  ;;  %3860 = vmatprep.subr.mxu0 %v3956_v4 }
 0x1eb   :  { %3904 = vmatpush3.msra.mxu1 %v4143_v56  ;;  %3861 = vmatpush3.msra.mxu0 %v4125_v50 }
 0x1ec   :  { %3905 = vmatprep.subr.mxu1 %v3956_v4  ;;  %3862 = vmatprep.subr.mxu0 %v3956_v4 }
 0x1ed   :  { %3906 = vmatpush3.msra.mxu1 %v4162_v62  ;;  %3863 = vmatpush3.msra.mxu0 %v4156_v60 }
 0x1ee   :  { %3907 = vmatprep.subr.mxu1 %v3956_v4  ;;  %3864 = vmatprep.subr.mxu0 %v3956_v4 }
 0x1ef   :  { %3908 = vmatpush3.msra.mxu1 %v4181_v8  ;;  %3865 = vmatpush3.msra.mxu0 %v4175_v3 }
 0x1f0   :  { %3909 = vmatprep.subr.mxu1 %v3956_v4  ;;  %3866 = vmatprep.subr.mxu0 %v3956_v4 }
 0x1f1   :  { %3910 = vmatpush3.msra.mxu1 %v4200_v31  ;;  %3867 = vmatpush3.msra.mxu0 %v4194_v15 }
 0x1f2   :  { %3911 = vmatprep.subr.mxu1 %v3956_v4  ;;  %3868 = vmatprep.subr.mxu0 %v3956_v4  ;;  %v1234_v18 = vpop.f32.mrf.mxu0 }
 0x1f3   :  { %3912 = vmatpush3.msra.mxu1 %v4216_v41  ;;  %3913 = vmatprep.mubr.msk.f32.mxu1 %vm3957_vm0, %v3956_v4  ;;  %v1235_v19 = vadd.f32 %v1234_v18, %v1116_v12 }
 0x1f4   :  { %3869 = vmatpush3.msra.mxu0 %v4210_v37  ;;  %3914 = vmatmul.mubr.msk.f32.vlgmr.msra.gmra.mxu1 %vm1975_vm4, %v5240_v44  ;;  %v3460_v23 = vpop.f32.mrf.mxu0 }
 0x1f5   :  { %3870 = vmatprep.subr.mxu0 %v3956_v4  ;;  %3878 = vmatprep.mubr.msk.f32.mxu0 %vm3957_vm0, %v3956_v4  ;;  %v1322_v24 = vadd.f32 %v1321_v5, %v1235_v19 }
 0x1f6   :  { %3871 = vmatpush3.msra.mxu0 %v4226_v46  ;;  %3931 = vset.pattern.permute.xlu0 %v5263_v25 }
 0x1f7   :  { %3872 = vmatprep.subr.mxu0 %v3956_v4  ;;  %2620 = vrot.lane.b32.xlu1 %v1322_v24, %s3962_s0 }
 0x1f8   :  { %3873 = vmatpush3.msra.mxu0 %v4240_v58 }
 0x1f9   :  { %3874 = vmatprep.subr.mxu0 %v3956_v4 }
 0x1fa   :  { %3875 = vmatpush3.msra.mxu0 %v4254_v34 }
 0x1fb   :  { %3876 = vmatprep.subr.mxu0 %v3956_v4 }
 0x1fc   :  { %3877 = vmatpush3.msra.mxu0 %v4265_v42 }
 0x1fd   :  { %3879 = vmatmul.mubr.msk.f32.vlgmr.msra.gmra.mxu0 %vm1975_vm4, %v5240_v44 }
 0x20a   :  { %v1569_v28 = vpop.f32.mrf.mxu1 }
 0x20c   :  { %v3565_v29 = vpop.f32.mrf.mxu1 }
 0x214   :  { %v1418_v30 = vpop.f32.mrf.mxu0 }
 0x215   :  { %v1570_v51 = vadd.f32 %v1569_v28, %v1418_v30 }
 0x216   :  { %v3530_v33 = vpop.f32.mrf.mxu0 }
 0x22c   :  { %v1762_v35 = vpop.f32.mrf.mxu1 }
 0x22e   :  { %v3635_v36 = vpop.f32.mrf.mxu1 }
 0x236   :  { %v1673_v43 = vpop.f32.mrf.mxu0 }
 0x237   :  { %v1674_v56 = vadd.f32 %v1673_v43, %v1570_v51 }
 0x238   :  { %v3600_v47 = vpop.f32.mrf.mxu0 }
 0x239   :  { %v1763_v4 = vadd.f32 %v1762_v35, %v1674_v56 }
 0x24e   :  { %v1968_v48 = vpop.f32.mrf.mxu1 }
 0x250   :  { %v3705_v50 = vpop.f32.mrf.mxu1 }
 0x258   :  { %v1881_v60 = vpop.f32.mrf.mxu0 }
 0x259   :  { %v1882_v61 = vadd.f32 %v1881_v60, %v1763_v4 }
 0x25a   :  { %v3670_v62 = vpop.f32.mrf.mxu0 }
 0x25b   :  { %v1969_v3 = vadd.f32 %v1968_v48, %v1882_v61 }
 0x25d   :  { %2624 = vrot.lane.b32.xlu0 %v1969_v3, %s3963_s16 }
 0x269   :  { %v2621_v9 = vpop.permute.xlu1 %2620 }
 0x26a   :  { %v2632_v52 = vsel %vm2631_vm5, %v4922_v13, %v2621_v9 }
 0x270   :  { %v2216_v7 = vpop.f32.mrf.mxu1 }
 0x272   :  { %v3775_v8 = vpop.f32.mrf.mxu1 }
 0x27a   :  { %v2065_v15 = vpop.f32.mrf.mxu0 }
 0x27b   :  { %v2217_v42 = vadd.f32 %v2216_v7, %v2065_v15 }
 0x27c   :  { %v3740_v27 = vpop.f32.mrf.mxu0 }
 0x292   :  { %v2409_v31 = vpop.f32.mrf.mxu1 }
 0x294   :  { %v3845_v32 = vpop.f32.mrf.mxu1 }
 0x29c   :  { %v2320_v37 = vpop.f32.mrf.mxu0 }
 0x29d   :  { %v2321_v49 = vadd.f32 %v2320_v37, %v2217_v42 }
 0x29e   :  { %v3810_v38 = vpop.f32.mrf.mxu0 }
 0x29f   :  { %v2410_v58 = vadd.f32 %v2409_v31, %v2321_v49 }
 0x2b4   :  { %v2615_v41 = vpop.f32.mrf.mxu1 }
 0x2b6   :  { %v3915_v46 = vpop.f32.mrf.mxu1 }
 0x2bd   :  { %v2528_v63 = vpop.f32.mrf.mxu0 }
 0x2be   :  { %v2529_v34 = vadd.f32 %v2528_v63, %v2410_v58 }
 0x2bf   :  { %v3880_v44 = vpop.f32.mrf.mxu0 }
 0x2c0   :  { %v2616_v59 = vadd.f32 %v2615_v41, %v2529_v34 }
 0x2c2   :  { %2628 = vrot.lane.b32.xlu1 %v2616_v59, %s3964_s17 }
 0x2cf   :  { %v2625_v55 = vpop.permute.xlu0 %2624 }
 0x2d0   :  { %v2634_v14 = vsel %vm2633_vm6, %v2632_v52, %v2625_v55 }
 0x334   :  { %v2629_v2 = vpop.permute.xlu1 %2628 }
 0x335   :  { %v2636_v1 = vsel %vm2635_vm7, %v2634_v14, %v2629_v2 }
 0x336   :  { %2637 = vst [vmem:[#allocation2] sm:$0xff] %v2636_v1 }
 0x337   :  { %3944 = shalt.err (!%p3941_p4)
}
 0x338   :  { %2647 = dma.vmem_to_hbm [thread:$0]  %s2645_s19, 128, %s5190_s2, [#allocation3]  }
 0x339   :  { %3953 = dma.done.wait [#allocation3], 128  }
 0x33a   :  { %3954 = vsyncadd [#allocation3], 4294967168 }
 0x33b   :  { %2651 = vsyncpa [#allocation3], 1 }

</bundles_post_ra>
